<compile_context>
chip_gen: v5e
topology: v5e:2x2
jax: 0.10.0
libtpu: 0.0.40
codegen_flags: <defaults>
</compile_context>

<pallas_src>
import jax
import jax.numpy as jnp
from jax.experimental import pallas as pl
from jax.experimental.pallas import tpu as pltpu


# ----------------------------------------------------------------------------
# Fused kernel: GRU layer 0 -> ... -> GRU layer L-1 -> fc1/ReLU/fc2/ReLU/fc3
# ----------------------------------------------------------------------------
def _make_fused_gru_mlp_kernel(num_layers, seq_len, hidden_size, batch_pad):
    T, H, BP = seq_len, hidden_size, batch_pad
    H2, H3 = 2 * hidden_size, 3 * hidden_size

    def kernel(*refs):
        # refs = x_tm, (wih, whh, bx, bhn) * L, w1, b1, w2, b2, w3, b3,
        #        o_ref, gx_scr, hseq_scr
        x_ref = refs[0]
        layer_refs = [tuple(refs[1 + 4 * l: 1 + 4 * (l + 1)]) for l in range(num_layers)]
        w1_ref, b1_ref, w2_ref, b2_ref, w3_ref, b3_ref = refs[1 + 4 * num_layers:-3]
        o_ref, gx_scr, hseq_scr = refs[-3:]

        h = None
        for l, (wih_ref, whh_ref, bx_ref, bhn_ref) in enumerate(layer_refs):
            last_layer = l == num_layers - 1

            # ---- Phase 1 (off the serial chain): input projections for ALL
            # timesteps in one (T*BP, Din) @ (Din, 3H) bf16 matmul, merged
            # biases added, result parked time-major in a VMEM scratch.
            if l == 0:
                seq2d = x_ref[...].reshape(T * BP, x_ref.shape[-1])   # already time-major
            else:
                seq2d = hseq_scr[...].reshape(T * BP, H)              # previous layer's outputs
            gx = jnp.dot(seq2d.astype(jnp.bfloat16), wih_ref[...],
                         preferred_element_type=jnp.float32) + bx_ref[...]   # (T*BP, 3H)
            gx_scr[...] = gx.reshape(T, BP, H3)

            whh = whh_ref[...]                                        # (H, 3H) bf16, hoisted
            bhn = jnp.broadcast_to(bhn_ref[...], (BP, H))             # hoisted broadcast

            # ---- Phase 2: serial recurrence.  One fused (BP,H)@(H,3H) bf16
            # hidden matmul, one sigmoid over the r|z lane span, one tanh.
            h = jnp.zeros((BP, H), jnp.float32)
            for t in range(T):
                gxt = gx_scr[t]                                       # (BP, 3H), aligned load
                gh = jnp.dot(h.astype(jnp.bfloat16), whh,
                             preferred_element_type=jnp.float32)      # (BP, 3H)
                rz = jax.nn.sigmoid(gxt[:, :H2] + gh[:, :H2])         # r|z: one EUP pass
                r = rz[:, :H]
                z = rz[:, H:]
                n = jnp.tanh(gxt[:, H2:] + r * (gh[:, H2:] + bhn))
                h = (1.0 - z) * n + z * h
                if not last_layer:
                    hseq_scr[t] = h                                   # time-major for next layer

        # ---- MLP head on the final hidden state (f32, off the recurrent chain).
        a1 = jnp.maximum(
            jnp.dot(h, w1_ref[...], preferred_element_type=jnp.float32) + b1_ref[...], 0.0)
        a2 = jnp.maximum(
            jnp.dot(a1, w2_ref[...], preferred_element_type=jnp.float32) + b2_ref[...], 0.0)
        # TODO(synk): if output_size / MLP widths grow, pad the head to 128 lanes for a
        # lane-dense final store and slice in the wrapper.
        o_ref[...] = (
            jnp.dot(a2, w3_ref[...], preferred_element_type=jnp.float32) + b3_ref[...])

    return kernel


def gru_mlp_forward(params, x):
    """x: (B, T, input_size) batch-first (PyTorch convention). Returns (B, output_size)."""
    num_layers = len(params["gru"])
    B, T, _ = x.shape
    H = params["gru"][0]["whh"].shape[0]
    out_dim = params["fc3"][0].shape[1]
    BP = max(8, -(-B // 8) * 8)          # pad batch to the 8-sublane boundary

    # Time-major + batch-padded input: every per-step row block inside the kernel
    # starts at a sublane offset that is a multiple of 8 (no relayout on the
    # recurrent critical path).  This is a tiny one-time XLA op on ~1 KB of data.
    x_tm = jnp.transpose(x, (1, 0, 2))
    x_tm = jnp.pad(x_tm, ((0, 0), (0, BP - B), (0, 0)))

    inputs = [x_tm]
    for lp in params["gru"]:
        inputs.extend([
            lp["wih"].astype(jnp.bfloat16),   # (Din, 3H) lane-stacked r|z|n
            lp["whh"].astype(jnp.bfloat16),   # (H,   3H) lane-stacked r|z|n
            lp["bx"],                         # (1, 3H) merged biases, f32
            lp["bhn"],                        # (1, H)  b_hn (scaled by r), f32
        ])
    (w1, b1), (w2, b2), (w3, b3) = params["fc1"], params["fc2"], params["fc3"]
    inputs.extend([w1, b1, w2, b2, w3, b3])

    kernel = _make_fused_gru_mlp_kernel(num_layers, T, H, BP)
    out = pl.pallas_call(
        kernel,
        out_shape=jax.ShapeDtypeStruct((BP, out_dim), jnp.float32),
        in_specs=[pl.BlockSpec(memory_space=pltpu.MemorySpace.VMEM) for _ in inputs],
        out_specs=pl.BlockSpec(memory_space=pltpu.MemorySpace.VMEM),
        scratch_shapes=[
            pltpu.VMEM((T, BP, 3 * H), jnp.float32),   # gate pre-activations, time-major
            pltpu.VMEM((T, BP, H), jnp.float32),       # inter-layer hidden sequence
        ],
    )(*inputs)
    return out[:B]


gru_model_forward = jax.jit(gru_mlp_forward)


# ----------------------------------------------------------------------------
# Pure-JAX references (same math, no Pallas) for correctness checking.
#   bf16_matmul=True mirrors the kernel's precision policy (bf16 MXU operands,
#   f32 accumulation / gate math / MLP head); False is the full-f32 semantics
#   of the original PyTorch module.
# ----------------------------------------------------------------------------
def gru_mlp_reference(params, x, *, bf16_matmul=False):
    def mm(a, b):
        if bf16_matmul:
            return jnp.dot(a.astype(jnp.bfloat16), b.astype(jnp.bfloat16),
                           preferred_element_type=jnp.float32)
        return jnp.dot(a, b, preferred_element_type=jnp.float32)

    B, T, _ = x.shape
    seq = x
    for lp in params["gru"]:
        wih, whh, bx, bhn = lp["wih"], lp["whh"], lp["bx"], lp["bhn"]
        H = whh.shape[0]
        h = jnp.zeros((B, H), jnp.float32)
        outs = []
        for t in range(T):
            x_t = seq[:, t, :]
            gx = mm(x_t, wih) + bx
            gh = mm(h, whh)
            r = jax.nn.sigmoid(gx[:, :H] + gh[:, :H])
            z = jax.nn.sigmoid(gx[:, H:2 * H] + gh[:, H:2 * H])
            n = jnp.tanh(gx[:, 2 * H:] + r * (gh[:, 2 * H:] + bhn))
            h = (1.0 - z) * n + z * h
            outs.append(h)
        seq = jnp.stack(outs, axis=1)
    h_last = seq[:, -1, :]
    (w1, b1), (w2, b2), (w3, b3) = params["fc1"], params["fc2"], params["fc3"]
    a1 = jnp.maximum(h_last @ w1 + b1, 0.0)
    a2 = jnp.maximum(a1 @ w2 + b2, 0.0)
    return a2 @ w3 + b3


# ----------------------------------------------------------------------------
# Parameter initialization (deterministic, PyTorch-style uniform(-k, k)),
# stored directly in the kernel-friendly lane-stacked / merged-bias layout.
# ----------------------------------------------------------------------------
def init_params(key, input_size, hidden_size, output_size, num_layers):
    bound_gru = 1.0 / (hidden_size ** 0.5)

    def uniform(k, shape, bound):
        return jax.random.uniform(k, shape, jnp.float32, minval=-bound, maxval=bound)

    params = {"gru": []}
    for layer in range(num_layers):
        din = input_size if layer == 0 else hidden_size
        key, k1, k2, k3, k4 = jax.random.split(key, 5)
        w_ih = uniform(k1, (3, din, hidden_size), bound_gru)          # [W_ir, W_iz, W_in]^T
        w_hh = uniform(k2, (3, hidden_size, hidden_size), bound_gru)  # [W_hr, W_hz, W_hn]^T
        b_ih = uniform(k3, (3, 1, hidden_size), bound_gru)            # [b_ir, b_iz, b_in]
        b_hh = uniform(k4, (3, 1, hidden_size), bound_gru)            # [b_hr, b_hz, b_hn]
        params["gru"].append({
            # lane-stacked (r | z | n) so one (., 3H) matmul feeds all gates
            "wih": jnp.concatenate([w_ih[0], w_ih[1], w_ih[2]], axis=1),   # (din, 3H)
            "whh": jnp.concatenate([w_hh[0], w_hh[1], w_hh[2]], axis=1),   # (H,   3H)
            # merged biases: [b_ir+b_hr | b_iz+b_hz | b_in]
            "bx": jnp.concatenate(
                [b_ih[0] + b_hh[0], b_ih[1] + b_hh[1], b_ih[2]], axis=1),  # (1, 3H)
            "bhn": b_hh[2],                                                # (1, H)
        })

    h1 = int(hidden_size * 0.75)
    h2 = int(hidden_size * 0.5)

    def lin_init(kw, kb, fan_in, fan_out):
        bound = 1.0 / (fan_in ** 0.5)
        return uniform(kw, (fan_in, fan_out), bound), uniform(kb, (1, fan_out), bound)

    key, k1, k2, k3, k4, k5, k6 = jax.random.split(key, 7)
    params["fc1"] = lin_init(k1, k2, hidden_size, h1)
    params["fc2"] = lin_init(k3, k4, h1, h2)
    params["fc3"] = lin_init(k5, k6, h2, output_size)
    return params


if __name__ == "__main__":
    # Small, module-consistent shapes.
    batch = 2
    seq_len = 8
    input_size = 4
    hidden_size = 32
    output_size = 4
    num_layers = 2
    # dropout: inference-time no-op, omitted.

    key = jax.random.PRNGKey(0)
    key, pkey, xkey = jax.random.split(key, 3)

    params = init_params(pkey, input_size, hidden_size, output_size, num_layers)
    x = jax.random.normal(xkey, (batch, seq_len, input_size), jnp.float32)

    out = gru_model_forward(params, x)
    jax.block_until_ready(out)
    assert out.shape == (batch, output_size)

    # Tight check against the precision-matched reference (same bf16-operand /
    # f32-accumulate matmul policy as the kernel).
    ref_mixed = gru_mlp_reference(params, x, bf16_matmul=True)
    d_mixed = float(jnp.max(jnp.abs(out - ref_mixed)))
    assert bool(jnp.allclose(out, ref_mixed, rtol=5e-3, atol=5e-3)), (
        f"kernel vs mixed-precision reference mismatch: max |diff| = {d_mixed}")

    # Looser check against the full-f32 semantics of the original module
    # (difference here is the intentional bf16 weight/activation rounding).
    ref_f32 = gru_mlp_reference(params, x, bf16_matmul=False)
    d_f32 = float(jnp.max(jnp.abs(out - ref_f32)))
    assert bool(jnp.allclose(out, ref_f32, rtol=5e-2, atol=5e-2)), (
        f"kernel vs f32 reference mismatch: max |diff| = {d_f32}")

    print("KERNEL_OK")
</pallas_src>

<mosaic_0001>
module attributes {stable_mosaic.version = 11 : i64} {
  func.func @kernel(%arg0: memref<8x8x4xf32, #tpu.memory_space<vmem>>, %arg1: memref<4x96xbf16, #tpu.memory_space<vmem>>, %arg2: memref<32x96xbf16, #tpu.memory_space<vmem>>, %arg3: memref<1x96xf32, #tpu.memory_space<vmem>>, %arg4: memref<1x32xf32, #tpu.memory_space<vmem>>, %arg5: memref<32x96xbf16, #tpu.memory_space<vmem>>, %arg6: memref<32x96xbf16, #tpu.memory_space<vmem>>, %arg7: memref<1x96xf32, #tpu.memory_space<vmem>>, %arg8: memref<1x32xf32, #tpu.memory_space<vmem>>, %arg9: memref<32x24xf32, #tpu.memory_space<vmem>>, %arg10: memref<1x24xf32, #tpu.memory_space<vmem>>, %arg11: memref<24x16xf32, #tpu.memory_space<vmem>>, %arg12: memref<1x16xf32, #tpu.memory_space<vmem>>, %arg13: memref<16x4xf32, #tpu.memory_space<vmem>>, %arg14: memref<1x4xf32, #tpu.memory_space<vmem>>, %arg15: memref<8x4xf32, #tpu.memory_space<vmem>>, %arg16: memref<8x8x96xf32, #tpu.memory_space<vmem>>, %arg17: memref<8x8x32xf32, #tpu.memory_space<vmem>>) attributes {dimension_semantics = [], scalar_prefetch = 0 : i64, scratch_operands = 2 : i64, tpu.core_type = #tpu.core_type<tc>} {
    %c0 = arith.constant 0 : index
    %c0_0 = arith.constant 0 : index
    %c0_1 = arith.constant 0 : index
    %0 = vector.load %arg0[%c0, %c0_0, %c0_1] : memref<8x8x4xf32, #tpu.memory_space<vmem>>, vector<8x8x4xf32>
    %1 = vector.shape_cast %0 : vector<8x8x4xf32> to vector<64x4xf32>
    %2 = arith.truncf %1 : vector<64x4xf32> to vector<64x4xbf16>
    %c0_2 = arith.constant 0 : index
    %c0_3 = arith.constant 0 : index
    %3 = vector.load %arg1[%c0_2, %c0_3] : memref<4x96xbf16, #tpu.memory_space<vmem>>, vector<4x96xbf16>
    %cst = arith.constant dense<0.000000e+00> : vector<64x96xf32>
    %4 = tpu.matmul %2, %3, %cst {dimension_numbers = #tpu.dot_dimension_numbers<[1], [0], [0], [1], [0, 0, 1, 1], [], []>} : vector<64x4xbf16>, vector<4x96xbf16>, vector<64x96xf32> -> vector<64x96xf32>
    %c0_4 = arith.constant 0 : index
    %c0_5 = arith.constant 0 : index
    %5 = vector.load %arg3[%c0_4, %c0_5] : memref<1x96xf32, #tpu.memory_space<vmem>>, vector<1x96xf32>
    %6 = vector.broadcast %5 : vector<1x96xf32> to vector<64x96xf32>
    %7 = arith.addf %4, %6 : vector<64x96xf32>
    %8 = vector.shape_cast %7 : vector<64x96xf32> to vector<8x8x96xf32>
    %c0_6 = arith.constant 0 : index
    %c0_7 = arith.constant 0 : index
    %c0_8 = arith.constant 0 : index
    %9 = vector.load %arg16[%c0_6, %c0_7, %c0_8] : memref<8x8x96xf32, #tpu.memory_space<vmem>>, vector<8x8x96xf32>
    tpu.vector_store %arg16[%c0_6, %c0_7, %c0_8], %8 {strides = array<i32>} : memref<8x8x96xf32, #tpu.memory_space<vmem>>, vector<8x8x96xf32>,
    %c0_9 = arith.constant 0 : index
    %c0_10 = arith.constant 0 : index
    %10 = vector.load %arg2[%c0_9, %c0_10] : memref<32x96xbf16, #tpu.memory_space<vmem>>, vector<32x96xbf16>
    %c0_11 = arith.constant 0 : index
    %c0_12 = arith.constant 0 : index
    %11 = vector.load %arg4[%c0_11, %c0_12] : memref<1x32xf32, #tpu.memory_space<vmem>>, vector<1x32xf32>
    %12 = vector.shape_cast %11 : vector<1x32xf32> to vector<1x32xf32>
    %13 = vector.broadcast %12 : vector<1x32xf32> to vector<8x32xf32>
    %cst_13 = arith.constant 0.000000e+00 : f32
    %14 = vector.broadcast %cst_13 : f32 to vector<8x32xf32>
    %c0_14 = arith.constant 0 : index
    %c0_15 = arith.constant 0 : index
    %c0_16 = arith.constant 0 : index
    %15 = vector.load %arg16[%c0_14, %c0_15, %c0_16] : memref<8x8x96xf32, #tpu.memory_space<vmem>>, vector<1x8x96xf32>
    %16 = vector.shape_cast %15 : vector<1x8x96xf32> to vector<8x96xf32>
    %17 = arith.truncf %14 : vector<8x32xf32> to vector<8x32xbf16>
    %cst_17 = arith.constant dense<0.000000e+00> : vector<8x96xf32>
    %18 = tpu.matmul %17, %10, %cst_17 {dimension_numbers = #tpu.dot_dimension_numbers<[1], [0], [0], [1], [0, 0, 1, 1], [], []>} : vector<8x32xbf16>, vector<32x96xbf16>, vector<8x96xf32> -> vector<8x96xf32>
    %19 = vector.extract_strided_slice %16 {offsets = [0, 0], sizes = [8, 64], strides = [1, 1]} : vector<8x96xf32> to vector<8x64xf32>
    %20 = vector.extract_strided_slice %18 {offsets = [0, 0], sizes = [8, 64], strides = [1, 1]} : vector<8x96xf32> to vector<8x64xf32>
    %21 = arith.addf %19, %20 : vector<8x64xf32>
    %22 = arith.negf %21 : vector<8x64xf32>
    %23 = math.exp %22 : vector<8x64xf32>
    %cst_18 = arith.constant 1.000000e+00 : f32
    %24 = vector.broadcast %cst_18 : f32 to vector<8x64xf32>
    %25 = arith.addf %24, %23 : vector<8x64xf32>
    %26 = arith.divf %24, %25 : vector<8x64xf32>
    %27 = vector.extract_strided_slice %26 {offsets = [0, 0], sizes = [8, 32], strides = [1, 1]} : vector<8x64xf32> to vector<8x32xf32>
    %28 = vector.extract_strided_slice %26 {offsets = [0, 32], sizes = [8, 32], strides = [1, 1]} : vector<8x64xf32> to vector<8x32xf32>
    %29 = vector.extract_strided_slice %16 {offsets = [0, 64], sizes = [8, 32], strides = [1, 1]} : vector<8x96xf32> to vector<8x32xf32>
    %30 = vector.extract_strided_slice %18 {offsets = [0, 64], sizes = [8, 32], strides = [1, 1]} : vector<8x96xf32> to vector<8x32xf32>
    %31 = arith.addf %30, %13 : vector<8x32xf32>
    %32 = arith.mulf %27, %31 : vector<8x32xf32>
    %33 = arith.addf %29, %32 : vector<8x32xf32>
    %34 = math.tanh %33 : vector<8x32xf32>
    %cst_19 = arith.constant 1.000000e+00 : f32
    %35 = vector.broadcast %cst_19 : f32 to vector<8x32xf32>
    %36 = arith.subf %35, %28 : vector<8x32xf32>
    %37 = arith.mulf %36, %34 : vector<8x32xf32>
    %38 = arith.mulf %28, %14 : vector<8x32xf32>
    %39 = arith.addf %37, %38 : vector<8x32xf32>
    %c0_20 = arith.constant 0 : index
    %c0_21 = arith.constant 0 : index
    %c0_22 = arith.constant 0 : index
    %40 = vector.load %arg17[%c0_20, %c0_21, %c0_22] : memref<8x8x32xf32, #tpu.memory_space<vmem>>, vector<1x8x32xf32>
    %41 = vector.shape_cast %40 : vector<1x8x32xf32> to vector<8x32xf32>
    %42 = vector.shape_cast %39 : vector<8x32xf32> to vector<1x8x32xf32>
    tpu.vector_store %arg17[%c0_20, %c0_21, %c0_22], %42 {strides = array<i32>} : memref<8x8x32xf32, #tpu.memory_space<vmem>>, vector<1x8x32xf32>,
    %c1 = arith.constant 1 : index
    %c0_23 = arith.constant 0 : index
    %c0_24 = arith.constant 0 : index
    %43 = vector.load %arg16[%c1, %c0_23, %c0_24] : memref<8x8x96xf32, #tpu.memory_space<vmem>>, vector<1x8x96xf32>
    %44 = vector.shape_cast %43 : vector<1x8x96xf32> to vector<8x96xf32>
    %45 = arith.truncf %39 : vector<8x32xf32> to vector<8x32xbf16>
    %cst_25 = arith.constant dense<0.000000e+00> : vector<8x96xf32>
    %46 = tpu.matmul %45, %10, %cst_25 {dimension_numbers = #tpu.dot_dimension_numbers<[1], [0], [0], [1], [0, 0, 1, 1], [], []>} : vector<8x32xbf16>, vector<32x96xbf16>, vector<8x96xf32> -> vector<8x96xf32>
    %47 = vector.extract_strided_slice %44 {offsets = [0, 0], sizes = [8, 64], strides = [1, 1]} : vector<8x96xf32> to vector<8x64xf32>
    %48 = vector.extract_strided_slice %46 {offsets = [0, 0], sizes = [8, 64], strides = [1, 1]} : vector<8x96xf32> to vector<8x64xf32>
    %49 = arith.addf %47, %48 : vector<8x64xf32>
    %50 = arith.negf %49 : vector<8x64xf32>
    %51 = math.exp %50 : vector<8x64xf32>
    %cst_26 = arith.constant 1.000000e+00 : f32
    %52 = vector.broadcast %cst_26 : f32 to vector<8x64xf32>
    %53 = arith.addf %52, %51 : vector<8x64xf32>
    %54 = arith.divf %52, %53 : vector<8x64xf32>
    %55 = vector.extract_strided_slice %54 {offsets = [0, 0], sizes = [8, 32], strides = [1, 1]} : vector<8x64xf32> to vector<8x32xf32>
    %56 = vector.extract_strided_slice %54 {offsets = [0, 32], sizes = [8, 32], strides = [1, 1]} : vector<8x64xf32> to vector<8x32xf32>
    %57 = vector.extract_strided_slice %44 {offsets = [0, 64], sizes = [8, 32], strides = [1, 1]} : vector<8x96xf32> to vector<8x32xf32>
    %58 = vector.extract_strided_slice %46 {offsets = [0, 64], sizes = [8, 32], strides = [1, 1]} : vector<8x96xf32> to vector<8x32xf32>
    %59 = arith.addf %58, %13 : vector<8x32xf32>
    %60 = arith.mulf %55, %59 : vector<8x32xf32>
    %61 = arith.addf %57, %60 : vector<8x32xf32>
    %62 = math.tanh %61 : vector<8x32xf32>
    %cst_27 = arith.constant 1.000000e+00 : f32
    %63 = vector.broadcast %cst_27 : f32 to vector<8x32xf32>
    %64 = arith.subf %63, %56 : vector<8x32xf32>
    %65 = arith.mulf %64, %62 : vector<8x32xf32>
    %66 = arith.mulf %56, %39 : vector<8x32xf32>
    %67 = arith.addf %65, %66 : vector<8x32xf32>
    %c1_28 = arith.constant 1 : index
    %c0_29 = arith.constant 0 : index
    %c0_30 = arith.constant 0 : index
    %68 = vector.load %arg17[%c1_28, %c0_29, %c0_30] : memref<8x8x32xf32, #tpu.memory_space<vmem>>, vector<1x8x32xf32>
    %69 = vector.shape_cast %68 : vector<1x8x32xf32> to vector<8x32xf32>
    %70 = vector.shape_cast %67 : vector<8x32xf32> to vector<1x8x32xf32>
    tpu.vector_store %arg17[%c1_28, %c0_29, %c0_30], %70 {strides = array<i32>} : memref<8x8x32xf32, #tpu.memory_space<vmem>>, vector<1x8x32xf32>,
    %c2 = arith.constant 2 : index
    %c0_31 = arith.constant 0 : index
    %c0_32 = arith.constant 0 : index
    %71 = vector.load %arg16[%c2, %c0_31, %c0_32] : memref<8x8x96xf32, #tpu.memory_space<vmem>>, vector<1x8x96xf32>
    %72 = vector.shape_cast %71 : vector<1x8x96xf32> to vector<8x96xf32>
    %73 = arith.truncf %67 : vector<8x32xf32> to vector<8x32xbf16>
    %cst_33 = arith.constant dense<0.000000e+00> : vector<8x96xf32>
    %74 = tpu.matmul %73, %10, %cst_33 {dimension_numbers = #tpu.dot_dimension_numbers<[1], [0], [0], [1], [0, 0, 1, 1], [], []>} : vector<8x32xbf16>, vector<32x96xbf16>, vector<8x96xf32> -> vector<8x96xf32>
    %75 = vector.extract_strided_slice %72 {offsets = [0, 0], sizes = [8, 64], strides = [1, 1]} : vector<8x96xf32> to vector<8x64xf32>
    %76 = vector.extract_strided_slice %74 {offsets = [0, 0], sizes = [8, 64], strides = [1, 1]} : vector<8x96xf32> to vector<8x64xf32>
    %77 = arith.addf %75, %76 : vector<8x64xf32>
    %78 = arith.negf %77 : vector<8x64xf32>
    %79 = math.exp %78 : vector<8x64xf32>
    %cst_34 = arith.constant 1.000000e+00 : f32
    %80 = vector.broadcast %cst_34 : f32 to vector<8x64xf32>
    %81 = arith.addf %80, %79 : vector<8x64xf32>
    %82 = arith.divf %80, %81 : vector<8x64xf32>
    %83 = vector.extract_strided_slice %82 {offsets = [0, 0], sizes = [8, 32], strides = [1, 1]} : vector<8x64xf32> to vector<8x32xf32>
    %84 = vector.extract_strided_slice %82 {offsets = [0, 32], sizes = [8, 32], strides = [1, 1]} : vector<8x64xf32> to vector<8x32xf32>
    %85 = vector.extract_strided_slice %72 {offsets = [0, 64], sizes = [8, 32], strides = [1, 1]} : vector<8x96xf32> to vector<8x32xf32>
    %86 = vector.extract_strided_slice %74 {offsets = [0, 64], sizes = [8, 32], strides = [1, 1]} : vector<8x96xf32> to vector<8x32xf32>
    %87 = arith.addf %86, %13 : vector<8x32xf32>
    %88 = arith.mulf %83, %87 : vector<8x32xf32>
    %89 = arith.addf %85, %88 : vector<8x32xf32>
    %90 = math.tanh %89 : vector<8x32xf32>
    %cst_35 = arith.constant 1.000000e+00 : f32
    %91 = vector.broadcast %cst_35 : f32 to vector<8x32xf32>
    %92 = arith.subf %91, %84 : vector<8x32xf32>
    %93 = arith.mulf %92, %90 : vector<8x32xf32>
    %94 = arith.mulf %84, %67 : vector<8x32xf32>
    %95 = arith.addf %93, %94 : vector<8x32xf32>
    %c2_36 = arith.constant 2 : index
    %c0_37 = arith.constant 0 : index
    %c0_38 = arith.constant 0 : index
    %96 = vector.load %arg17[%c2_36, %c0_37, %c0_38] : memref<8x8x32xf32, #tpu.memory_space<vmem>>, vector<1x8x32xf32>
    %97 = vector.shape_cast %96 : vector<1x8x32xf32> to vector<8x32xf32>
    %98 = vector.shape_cast %95 : vector<8x32xf32> to vector<1x8x32xf32>
    tpu.vector_store %arg17[%c2_36, %c0_37, %c0_38], %98 {strides = array<i32>} : memref<8x8x32xf32, #tpu.memory_space<vmem>>, vector<1x8x32xf32>,
    %c3 = arith.constant 3 : index
    %c0_39 = arith.constant 0 : index
    %c0_40 = arith.constant 0 : index
    %99 = vector.load %arg16[%c3, %c0_39, %c0_40] : memref<8x8x96xf32, #tpu.memory_space<vmem>>, vector<1x8x96xf32>
    %100 = vector.shape_cast %99 : vector<1x8x96xf32> to vector<8x96xf32>
    %101 = arith.truncf %95 : vector<8x32xf32> to vector<8x32xbf16>
    %cst_41 = arith.constant dense<0.000000e+00> : vector<8x96xf32>
    %102 = tpu.matmul %101, %10, %cst_41 {dimension_numbers = #tpu.dot_dimension_numbers<[1], [0], [0], [1], [0, 0, 1, 1], [], []>} : vector<8x32xbf16>, vector<32x96xbf16>, vector<8x96xf32> -> vector<8x96xf32>
    %103 = vector.extract_strided_slice %100 {offsets = [0, 0], sizes = [8, 64], strides = [1, 1]} : vector<8x96xf32> to vector<8x64xf32>
    %104 = vector.extract_strided_slice %102 {offsets = [0, 0], sizes = [8, 64], strides = [1, 1]} : vector<8x96xf32> to vector<8x64xf32>
    %105 = arith.addf %103, %104 : vector<8x64xf32>
    %106 = arith.negf %105 : vector<8x64xf32>
    %107 = math.exp %106 : vector<8x64xf32>
    %cst_42 = arith.constant 1.000000e+00 : f32
    %108 = vector.broadcast %cst_42 : f32 to vector<8x64xf32>
    %109 = arith.addf %108, %107 : vector<8x64xf32>
    %110 = arith.divf %108, %109 : vector<8x64xf32>
    %111 = vector.extract_strided_slice %110 {offsets = [0, 0], sizes = [8, 32], strides = [1, 1]} : vector<8x64xf32> to vector<8x32xf32>
    %112 = vector.extract_strided_slice %110 {offsets = [0, 32], sizes = [8, 32], strides = [1, 1]} : vector<8x64xf32> to vector<8x32xf32>
    %113 = vector.extract_strided_slice %100 {offsets = [0, 64], sizes = [8, 32], strides = [1, 1]} : vector<8x96xf32> to vector<8x32xf32>
    %114 = vector.extract_strided_slice %102 {offsets = [0, 64], sizes = [8, 32], strides = [1, 1]} : vector<8x96xf32> to vector<8x32xf32>
    %115 = arith.addf %114, %13 : vector<8x32xf32>
    %116 = arith.mulf %111, %115 : vector<8x32xf32>
    %117 = arith.addf %113, %116 : vector<8x32xf32>
    %118 = math.tanh %117 : vector<8x32xf32>
    %cst_43 = arith.constant 1.000000e+00 : f32
    %119 = vector.broadcast %cst_43 : f32 to vector<8x32xf32>
    %120 = arith.subf %119, %112 : vector<8x32xf32>
    %121 = arith.mulf %120, %118 : vector<8x32xf32>
    %122 = arith.mulf %112, %95 : vector<8x32xf32>
    %123 = arith.addf %121, %122 : vector<8x32xf32>
    %c3_44 = arith.constant 3 : index
    %c0_45 = arith.constant 0 : index
    %c0_46 = arith.constant 0 : index
    %124 = vector.load %arg17[%c3_44, %c0_45, %c0_46] : memref<8x8x32xf32, #tpu.memory_space<vmem>>, vector<1x8x32xf32>
    %125 = vector.shape_cast %124 : vector<1x8x32xf32> to vector<8x32xf32>
    %126 = vector.shape_cast %123 : vector<8x32xf32> to vector<1x8x32xf32>
    tpu.vector_store %arg17[%c3_44, %c0_45, %c0_46], %126 {strides = array<i32>} : memref<8x8x32xf32, #tpu.memory_space<vmem>>, vector<1x8x32xf32>,
    %c4 = arith.constant 4 : index
    %c0_47 = arith.constant 0 : index
    %c0_48 = arith.constant 0 : index
    %127 = vector.load %arg16[%c4, %c0_47, %c0_48] : memref<8x8x96xf32, #tpu.memory_space<vmem>>, vector<1x8x96xf32>
    %128 = vector.shape_cast %127 : vector<1x8x96xf32> to vector<8x96xf32>
    %129 = arith.truncf %123 : vector<8x32xf32> to vector<8x32xbf16>
    %cst_49 = arith.constant dense<0.000000e+00> : vector<8x96xf32>
    %130 = tpu.matmul %129, %10, %cst_49 {dimension_numbers = #tpu.dot_dimension_numbers<[1], [0], [0], [1], [0, 0, 1, 1], [], []>} : vector<8x32xbf16>, vector<32x96xbf16>, vector<8x96xf32> -> vector<8x96xf32>
    %131 = vector.extract_strided_slice %128 {offsets = [0, 0], sizes = [8, 64], strides = [1, 1]} : vector<8x96xf32> to vector<8x64xf32>
    %132 = vector.extract_strided_slice %130 {offsets = [0, 0], sizes = [8, 64], strides = [1, 1]} : vector<8x96xf32> to vector<8x64xf32>
    %133 = arith.addf %131, %132 : vector<8x64xf32>
    %134 = arith.negf %133 : vector<8x64xf32>
    %135 = math.exp %134 : vector<8x64xf32>
    %cst_50 = arith.constant 1.000000e+00 : f32
    %136 = vector.broadcast %cst_50 : f32 to vector<8x64xf32>
    %137 = arith.addf %136, %135 : vector<8x64xf32>
    %138 = arith.divf %136, %137 : vector<8x64xf32>
    %139 = vector.extract_strided_slice %138 {offsets = [0, 0], sizes = [8, 32], strides = [1, 1]} : vector<8x64xf32> to vector<8x32xf32>
    %140 = vector.extract_strided_slice %138 {offsets = [0, 32], sizes = [8, 32], strides = [1, 1]} : vector<8x64xf32> to vector<8x32xf32>
    %141 = vector.extract_strided_slice %128 {offsets = [0, 64], sizes = [8, 32], strides = [1, 1]} : vector<8x96xf32> to vector<8x32xf32>
    %142 = vector.extract_strided_slice %130 {offsets = [0, 64], sizes = [8, 32], strides = [1, 1]} : vector<8x96xf32> to vector<8x32xf32>
    %143 = arith.addf %142, %13 : vector<8x32xf32>
    %144 = arith.mulf %139, %143 : vector<8x32xf32>
    %145 = arith.addf %141, %144 : vector<8x32xf32>
    %146 = math.tanh %145 : vector<8x32xf32>
    %cst_51 = arith.constant 1.000000e+00 : f32
    %147 = vector.broadcast %cst_51 : f32 to vector<8x32xf32>
    %148 = arith.subf %147, %140 : vector<8x32xf32>
    %149 = arith.mulf %148, %146 : vector<8x32xf32>
    %150 = arith.mulf %140, %123 : vector<8x32xf32>
    %151 = arith.addf %149, %150 : vector<8x32xf32>
    %c4_52 = arith.constant 4 : index
    %c0_53 = arith.constant 0 : index
    %c0_54 = arith.constant 0 : index
    %152 = vector.load %arg17[%c4_52, %c0_53, %c0_54] : memref<8x8x32xf32, #tpu.memory_space<vmem>>, vector<1x8x32xf32>
    %153 = vector.shape_cast %152 : vector<1x8x32xf32> to vector<8x32xf32>
    %154 = vector.shape_cast %151 : vector<8x32xf32> to vector<1x8x32xf32>
    tpu.vector_store %arg17[%c4_52, %c0_53, %c0_54], %154 {strides = array<i32>} : memref<8x8x32xf32, #tpu.memory_space<vmem>>, vector<1x8x32xf32>,
    %c5 = arith.constant 5 : index
    %c0_55 = arith.constant 0 : index
    %c0_56 = arith.constant 0 : index
    %155 = vector.load %arg16[%c5, %c0_55, %c0_56] : memref<8x8x96xf32, #tpu.memory_space<vmem>>, vector<1x8x96xf32>
    %156 = vector.shape_cast %155 : vector<1x8x96xf32> to vector<8x96xf32>
    %157 = arith.truncf %151 : vector<8x32xf32> to vector<8x32xbf16>
    %cst_57 = arith.constant dense<0.000000e+00> : vector<8x96xf32>
    %158 = tpu.matmul %157, %10, %cst_57 {dimension_numbers = #tpu.dot_dimension_numbers<[1], [0], [0], [1], [0, 0, 1, 1], [], []>} : vector<8x32xbf16>, vector<32x96xbf16>, vector<8x96xf32> -> vector<8x96xf32>
    %159 = vector.extract_strided_slice %156 {offsets = [0, 0], sizes = [8, 64], strides = [1, 1]} : vector<8x96xf32> to vector<8x64xf32>
    %160 = vector.extract_strided_slice %158 {offsets = [0, 0], sizes = [8, 64], strides = [1, 1]} : vector<8x96xf32> to vector<8x64xf32>
    %161 = arith.addf %159, %160 : vector<8x64xf32>
    %162 = arith.negf %161 : vector<8x64xf32>
    %163 = math.exp %162 : vector<8x64xf32>
    %cst_58 = arith.constant 1.000000e+00 : f32
    %164 = vector.broadcast %cst_58 : f32 to vector<8x64xf32>
    %165 = arith.addf %164, %163 : vector<8x64xf32>
    %166 = arith.divf %164, %165 : vector<8x64xf32>
    %167 = vector.extract_strided_slice %166 {offsets = [0, 0], sizes = [8, 32], strides = [1, 1]} : vector<8x64xf32> to vector<8x32xf32>
    %168 = vector.extract_strided_slice %166 {offsets = [0, 32], sizes = [8, 32], strides = [1, 1]} : vector<8x64xf32> to vector<8x32xf32>
    %169 = vector.extract_strided_slice %156 {offsets = [0, 64], sizes = [8, 32], strides = [1, 1]} : vector<8x96xf32> to vector<8x32xf32>
    %170 = vector.extract_strided_slice %158 {offsets = [0, 64], sizes = [8, 32], strides = [1, 1]} : vector<8x96xf32> to vector<8x32xf32>
    %171 = arith.addf %170, %13 : vector<8x32xf32>
    %172 = arith.mulf %167, %171 : vector<8x32xf32>
    %173 = arith.addf %169, %172 : vector<8x32xf32>
    %174 = math.tanh %173 : vector<8x32xf32>
    %cst_59 = arith.constant 1.000000e+00 : f32
    %175 = vector.broadcast %cst_59 : f32 to vector<8x32xf32>
    %176 = arith.subf %175, %168 : vector<8x32xf32>
    %177 = arith.mulf %176, %174 : vector<8x32xf32>
    %178 = arith.mulf %168, %151 : vector<8x32xf32>
    %179 = arith.addf %177, %178 : vector<8x32xf32>
    %c5_60 = arith.constant 5 : index
    %c0_61 = arith.constant 0 : index
    %c0_62 = arith.constant 0 : index
    %180 = vector.load %arg17[%c5_60, %c0_61, %c0_62] : memref<8x8x32xf32, #tpu.memory_space<vmem>>, vector<1x8x32xf32>
    %181 = vector.shape_cast %180 : vector<1x8x32xf32> to vector<8x32xf32>
    %182 = vector.shape_cast %179 : vector<8x32xf32> to vector<1x8x32xf32>
    tpu.vector_store %arg17[%c5_60, %c0_61, %c0_62], %182 {strides = array<i32>} : memref<8x8x32xf32, #tpu.memory_space<vmem>>, vector<1x8x32xf32>,
    %c6 = arith.constant 6 : index
    %c0_63 = arith.constant 0 : index
    %c0_64 = arith.constant 0 : index
    %183 = vector.load %arg16[%c6, %c0_63, %c0_64] : memref<8x8x96xf32, #tpu.memory_space<vmem>>, vector<1x8x96xf32>
    %184 = vector.shape_cast %183 : vector<1x8x96xf32> to vector<8x96xf32>
    %185 = arith.truncf %179 : vector<8x32xf32> to vector<8x32xbf16>
    %cst_65 = arith.constant dense<0.000000e+00> : vector<8x96xf32>
    %186 = tpu.matmul %185, %10, %cst_65 {dimension_numbers = #tpu.dot_dimension_numbers<[1], [0], [0], [1], [0, 0, 1, 1], [], []>} : vector<8x32xbf16>, vector<32x96xbf16>, vector<8x96xf32> -> vector<8x96xf32>
    %187 = vector.extract_strided_slice %184 {offsets = [0, 0], sizes = [8, 64], strides = [1, 1]} : vector<8x96xf32> to vector<8x64xf32>
    %188 = vector.extract_strided_slice %186 {offsets = [0, 0], sizes = [8, 64], strides = [1, 1]} : vector<8x96xf32> to vector<8x64xf32>
    %189 = arith.addf %187, %188 : vector<8x64xf32>
    %190 = arith.negf %189 : vector<8x64xf32>
    %191 = math.exp %190 : vector<8x64xf32>
    %cst_66 = arith.constant 1.000000e+00 : f32
    %192 = vector.broadcast %cst_66 : f32 to vector<8x64xf32>
    %193 = arith.addf %192, %191 : vector<8x64xf32>
    %194 = arith.divf %192, %193 : vector<8x64xf32>
    %195 = vector.extract_strided_slice %194 {offsets = [0, 0], sizes = [8, 32], strides = [1, 1]} : vector<8x64xf32> to vector<8x32xf32>
    %196 = vector.extract_strided_slice %194 {offsets = [0, 32], sizes = [8, 32], strides = [1, 1]} : vector<8x64xf32> to vector<8x32xf32>
    %197 = vector.extract_strided_slice %184 {offsets = [0, 64], sizes = [8, 32], strides = [1, 1]} : vector<8x96xf32> to vector<8x32xf32>
    %198 = vector.extract_strided_slice %186 {offsets = [0, 64], sizes = [8, 32], strides = [1, 1]} : vector<8x96xf32> to vector<8x32xf32>
    %199 = arith.addf %198, %13 : vector<8x32xf32>
    %200 = arith.mulf %195, %199 : vector<8x32xf32>
    %201 = arith.addf %197, %200 : vector<8x32xf32>
    %202 = math.tanh %201 : vector<8x32xf32>
    %cst_67 = arith.constant 1.000000e+00 : f32
    %203 = vector.broadcast %cst_67 : f32 to vector<8x32xf32>
    %204 = arith.subf %203, %196 : vector<8x32xf32>
    %205 = arith.mulf %204, %202 : vector<8x32xf32>
    %206 = arith.mulf %196, %179 : vector<8x32xf32>
    %207 = arith.addf %205, %206 : vector<8x32xf32>
    %c6_68 = arith.constant 6 : index
    %c0_69 = arith.constant 0 : index
    %c0_70 = arith.constant 0 : index
    %208 = vector.load %arg17[%c6_68, %c0_69, %c0_70] : memref<8x8x32xf32, #tpu.memory_space<vmem>>, vector<1x8x32xf32>
    %209 = vector.shape_cast %208 : vector<1x8x32xf32> to vector<8x32xf32>
    %210 = vector.shape_cast %207 : vector<8x32xf32> to vector<1x8x32xf32>
    tpu.vector_store %arg17[%c6_68, %c0_69, %c0_70], %210 {strides = array<i32>} : memref<8x8x32xf32, #tpu.memory_space<vmem>>, vector<1x8x32xf32>,
    %c7 = arith.constant 7 : index
    %c0_71 = arith.constant 0 : index
    %c0_72 = arith.constant 0 : index
    %211 = vector.load %arg16[%c7, %c0_71, %c0_72] : memref<8x8x96xf32, #tpu.memory_space<vmem>>, vector<1x8x96xf32>
    %212 = vector.shape_cast %211 : vector<1x8x96xf32> to vector<8x96xf32>
    %213 = arith.truncf %207 : vector<8x32xf32> to vector<8x32xbf16>
    %cst_73 = arith.constant dense<0.000000e+00> : vector<8x96xf32>
    %214 = tpu.matmul %213, %10, %cst_73 {dimension_numbers = #tpu.dot_dimension_numbers<[1], [0], [0], [1], [0, 0, 1, 1], [], []>} : vector<8x32xbf16>, vector<32x96xbf16>, vector<8x96xf32> -> vector<8x96xf32>
    %215 = vector.extract_strided_slice %212 {offsets = [0, 0], sizes = [8, 64], strides = [1, 1]} : vector<8x96xf32> to vector<8x64xf32>
    %216 = vector.extract_strided_slice %214 {offsets = [0, 0], sizes = [8, 64], strides = [1, 1]} : vector<8x96xf32> to vector<8x64xf32>
    %217 = arith.addf %215, %216 : vector<8x64xf32>
    %218 = arith.negf %217 : vector<8x64xf32>
    %219 = math.exp %218 : vector<8x64xf32>
    %cst_74 = arith.constant 1.000000e+00 : f32
    %220 = vector.broadcast %cst_74 : f32 to vector<8x64xf32>
    %221 = arith.addf %220, %219 : vector<8x64xf32>
    %222 = arith.divf %220, %221 : vector<8x64xf32>
    %223 = vector.extract_strided_slice %222 {offsets = [0, 0], sizes = [8, 32], strides = [1, 1]} : vector<8x64xf32> to vector<8x32xf32>
    %224 = vector.extract_strided_slice %222 {offsets = [0, 32], sizes = [8, 32], strides = [1, 1]} : vector<8x64xf32> to vector<8x32xf32>
    %225 = vector.extract_strided_slice %212 {offsets = [0, 64], sizes = [8, 32], strides = [1, 1]} : vector<8x96xf32> to vector<8x32xf32>
    %226 = vector.extract_strided_slice %214 {offsets = [0, 64], sizes = [8, 32], strides = [1, 1]} : vector<8x96xf32> to vector<8x32xf32>
    %227 = arith.addf %226, %13 : vector<8x32xf32>
    %228 = arith.mulf %223, %227 : vector<8x32xf32>
    %229 = arith.addf %225, %228 : vector<8x32xf32>
    %230 = math.tanh %229 : vector<8x32xf32>
    %cst_75 = arith.constant 1.000000e+00 : f32
    %231 = vector.broadcast %cst_75 : f32 to vector<8x32xf32>
    %232 = arith.subf %231, %224 : vector<8x32xf32>
    %233 = arith.mulf %232, %230 : vector<8x32xf32>
    %234 = arith.mulf %224, %207 : vector<8x32xf32>
    %235 = arith.addf %233, %234 : vector<8x32xf32>
    %c7_76 = arith.constant 7 : index
    %c0_77 = arith.constant 0 : index
    %c0_78 = arith.constant 0 : index
    %236 = vector.load %arg17[%c7_76, %c0_77, %c0_78] : memref<8x8x32xf32, #tpu.memory_space<vmem>>, vector<1x8x32xf32>
    %237 = vector.shape_cast %236 : vector<1x8x32xf32> to vector<8x32xf32>
    %238 = vector.shape_cast %235 : vector<8x32xf32> to vector<1x8x32xf32>
    tpu.vector_store %arg17[%c7_76, %c0_77, %c0_78], %238 {strides = array<i32>} : memref<8x8x32xf32, #tpu.memory_space<vmem>>, vector<1x8x32xf32>,
    %c0_79 = arith.constant 0 : index
    %c0_80 = arith.constant 0 : index
    %c0_81 = arith.constant 0 : index
    %239 = vector.load %arg17[%c0_79, %c0_80, %c0_81] : memref<8x8x32xf32, #tpu.memory_space<vmem>>, vector<8x8x32xf32>
    %240 = vector.shape_cast %239 : vector<8x8x32xf32> to vector<64x32xf32>
    %241 = arith.truncf %240 : vector<64x32xf32> to vector<64x32xbf16>
    %c0_82 = arith.constant 0 : index
    %c0_83 = arith.constant 0 : index
    %242 = vector.load %arg5[%c0_82, %c0_83] : memref<32x96xbf16, #tpu.memory_space<vmem>>, vector<32x96xbf16>
    %cst_84 = arith.constant dense<0.000000e+00> : vector<64x96xf32>
    %243 = tpu.matmul %241, %242, %cst_84 {dimension_numbers = #tpu.dot_dimension_numbers<[1], [0], [0], [1], [0, 0, 1, 1], [], []>} : vector<64x32xbf16>, vector<32x96xbf16>, vector<64x96xf32> -> vector<64x96xf32>
    %c0_85 = arith.constant 0 : index
    %c0_86 = arith.constant 0 : index
    %244 = vector.load %arg7[%c0_85, %c0_86] : memref<1x96xf32, #tpu.memory_space<vmem>>, vector<1x96xf32>
    %245 = vector.broadcast %244 : vector<1x96xf32> to vector<64x96xf32>
    %246 = arith.addf %243, %245 : vector<64x96xf32>
    %247 = vector.shape_cast %246 : vector<64x96xf32> to vector<8x8x96xf32>
    %c0_87 = arith.constant 0 : index
    %c0_88 = arith.constant 0 : index
    %c0_89 = arith.constant 0 : index
    %248 = vector.load %arg16[%c0_87, %c0_88, %c0_89] : memref<8x8x96xf32, #tpu.memory_space<vmem>>, vector<8x8x96xf32>
    tpu.vector_store %arg16[%c0_87, %c0_88, %c0_89], %247 {strides = array<i32>} : memref<8x8x96xf32, #tpu.memory_space<vmem>>, vector<8x8x96xf32>,
    %c0_90 = arith.constant 0 : index
    %c0_91 = arith.constant 0 : index
    %249 = vector.load %arg6[%c0_90, %c0_91] : memref<32x96xbf16, #tpu.memory_space<vmem>>, vector<32x96xbf16>
    %c0_92 = arith.constant 0 : index
    %c0_93 = arith.constant 0 : index
    %250 = vector.load %arg8[%c0_92, %c0_93] : memref<1x32xf32, #tpu.memory_space<vmem>>, vector<1x32xf32>
    %251 = vector.shape_cast %250 : vector<1x32xf32> to vector<1x32xf32>
    %252 = vector.broadcast %251 : vector<1x32xf32> to vector<8x32xf32>
    %cst_94 = arith.constant 0.000000e+00 : f32
    %253 = vector.broadcast %cst_94 : f32 to vector<8x32xf32>
    %c0_95 = arith.constant 0 : index
    %c0_96 = arith.constant 0 : index
    %c0_97 = arith.constant 0 : index
    %254 = vector.load %arg16[%c0_95, %c0_96, %c0_97] : memref<8x8x96xf32, #tpu.memory_space<vmem>>, vector<1x8x96xf32>
    %255 = vector.shape_cast %254 : vector<1x8x96xf32> to vector<8x96xf32>
    %256 = arith.truncf %253 : vector<8x32xf32> to vector<8x32xbf16>
    %cst_98 = arith.constant dense<0.000000e+00> : vector<8x96xf32>
    %257 = tpu.matmul %256, %249, %cst_98 {dimension_numbers = #tpu.dot_dimension_numbers<[1], [0], [0], [1], [0, 0, 1, 1], [], []>} : vector<8x32xbf16>, vector<32x96xbf16>, vector<8x96xf32> -> vector<8x96xf32>
    %258 = vector.extract_strided_slice %255 {offsets = [0, 0], sizes = [8, 64], strides = [1, 1]} : vector<8x96xf32> to vector<8x64xf32>
    %259 = vector.extract_strided_slice %257 {offsets = [0, 0], sizes = [8, 64], strides = [1, 1]} : vector<8x96xf32> to vector<8x64xf32>
    %260 = arith.addf %258, %259 : vector<8x64xf32>
    %261 = arith.negf %260 : vector<8x64xf32>
    %262 = math.exp %261 : vector<8x64xf32>
    %cst_99 = arith.constant 1.000000e+00 : f32
    %263 = vector.broadcast %cst_99 : f32 to vector<8x64xf32>
    %264 = arith.addf %263, %262 : vector<8x64xf32>
    %265 = arith.divf %263, %264 : vector<8x64xf32>
    %266 = vector.extract_strided_slice %265 {offsets = [0, 0], sizes = [8, 32], strides = [1, 1]} : vector<8x64xf32> to vector<8x32xf32>
    %267 = vector.extract_strided_slice %265 {offsets = [0, 32], sizes = [8, 32], strides = [1, 1]} : vector<8x64xf32> to vector<8x32xf32>
    %268 = vector.extract_strided_slice %255 {offsets = [0, 64], sizes = [8, 32], strides = [1, 1]} : vector<8x96xf32> to vector<8x32xf32>
    %269 = vector.extract_strided_slice %257 {offsets = [0, 64], sizes = [8, 32], strides = [1, 1]} : vector<8x96xf32> to vector<8x32xf32>
    %270 = arith.addf %269, %252 : vector<8x32xf32>
    %271 = arith.mulf %266, %270 : vector<8x32xf32>
    %272 = arith.addf %268, %271 : vector<8x32xf32>
    %273 = math.tanh %272 : vector<8x32xf32>
    %cst_100 = arith.constant 1.000000e+00 : f32
    %274 = vector.broadcast %cst_100 : f32 to vector<8x32xf32>
    %275 = arith.subf %274, %267 : vector<8x32xf32>
    %276 = arith.mulf %275, %273 : vector<8x32xf32>
    %277 = arith.mulf %267, %253 : vector<8x32xf32>
    %278 = arith.addf %276, %277 : vector<8x32xf32>
    %c1_101 = arith.constant 1 : index
    %c0_102 = arith.constant 0 : index
    %c0_103 = arith.constant 0 : index
    %279 = vector.load %arg16[%c1_101, %c0_102, %c0_103] : memref<8x8x96xf32, #tpu.memory_space<vmem>>, vector<1x8x96xf32>
    %280 = vector.shape_cast %279 : vector<1x8x96xf32> to vector<8x96xf32>
    %281 = arith.truncf %278 : vector<8x32xf32> to vector<8x32xbf16>
    %cst_104 = arith.constant dense<0.000000e+00> : vector<8x96xf32>
    %282 = tpu.matmul %281, %249, %cst_104 {dimension_numbers = #tpu.dot_dimension_numbers<[1], [0], [0], [1], [0, 0, 1, 1], [], []>} : vector<8x32xbf16>, vector<32x96xbf16>, vector<8x96xf32> -> vector<8x96xf32>
    %283 = vector.extract_strided_slice %280 {offsets = [0, 0], sizes = [8, 64], strides = [1, 1]} : vector<8x96xf32> to vector<8x64xf32>
    %284 = vector.extract_strided_slice %282 {offsets = [0, 0], sizes = [8, 64], strides = [1, 1]} : vector<8x96xf32> to vector<8x64xf32>
    %285 = arith.addf %283, %284 : vector<8x64xf32>
    %286 = arith.negf %285 : vector<8x64xf32>
    %287 = math.exp %286 : vector<8x64xf32>
    %cst_105 = arith.constant 1.000000e+00 : f32
    %288 = vector.broadcast %cst_105 : f32 to vector<8x64xf32>
    %289 = arith.addf %288, %287 : vector<8x64xf32>
    %290 = arith.divf %288, %289 : vector<8x64xf32>
    %291 = vector.extract_strided_slice %290 {offsets = [0, 0], sizes = [8, 32], strides = [1, 1]} : vector<8x64xf32> to vector<8x32xf32>
    %292 = vector.extract_strided_slice %290 {offsets = [0, 32], sizes = [8, 32], strides = [1, 1]} : vector<8x64xf32> to vector<8x32xf32>
    %293 = vector.extract_strided_slice %280 {offsets = [0, 64], sizes = [8, 32], strides = [1, 1]} : vector<8x96xf32> to vector<8x32xf32>
    %294 = vector.extract_strided_slice %282 {offsets = [0, 64], sizes = [8, 32], strides = [1, 1]} : vector<8x96xf32> to vector<8x32xf32>
    %295 = arith.addf %294, %252 : vector<8x32xf32>
    %296 = arith.mulf %291, %295 : vector<8x32xf32>
    %297 = arith.addf %293, %296 : vector<8x32xf32>
    %298 = math.tanh %297 : vector<8x32xf32>
    %cst_106 = arith.constant 1.000000e+00 : f32
    %299 = vector.broadcast %cst_106 : f32 to vector<8x32xf32>
    %300 = arith.subf %299, %292 : vector<8x32xf32>
    %301 = arith.mulf %300, %298 : vector<8x32xf32>
    %302 = arith.mulf %292, %278 : vector<8x32xf32>
    %303 = arith.addf %301, %302 : vector<8x32xf32>
    %c2_107 = arith.constant 2 : index
    %c0_108 = arith.constant 0 : index
    %c0_109 = arith.constant 0 : index
    %304 = vector.load %arg16[%c2_107, %c0_108, %c0_109] : memref<8x8x96xf32, #tpu.memory_space<vmem>>, vector<1x8x96xf32>
    %305 = vector.shape_cast %304 : vector<1x8x96xf32> to vector<8x96xf32>
    %306 = arith.truncf %303 : vector<8x32xf32> to vector<8x32xbf16>
    %cst_110 = arith.constant dense<0.000000e+00> : vector<8x96xf32>
    %307 = tpu.matmul %306, %249, %cst_110 {dimension_numbers = #tpu.dot_dimension_numbers<[1], [0], [0], [1], [0, 0, 1, 1], [], []>} : vector<8x32xbf16>, vector<32x96xbf16>, vector<8x96xf32> -> vector<8x96xf32>
    %308 = vector.extract_strided_slice %305 {offsets = [0, 0], sizes = [8, 64], strides = [1, 1]} : vector<8x96xf32> to vector<8x64xf32>
    %309 = vector.extract_strided_slice %307 {offsets = [0, 0], sizes = [8, 64], strides = [1, 1]} : vector<8x96xf32> to vector<8x64xf32>
    %310 = arith.addf %308, %309 : vector<8x64xf32>
    %311 = arith.negf %310 : vector<8x64xf32>
    %312 = math.exp %311 : vector<8x64xf32>
    %cst_111 = arith.constant 1.000000e+00 : f32
    %313 = vector.broadcast %cst_111 : f32 to vector<8x64xf32>
    %314 = arith.addf %313, %312 : vector<8x64xf32>
    %315 = arith.divf %313, %314 : vector<8x64xf32>
    %316 = vector.extract_strided_slice %315 {offsets = [0, 0], sizes = [8, 32], strides = [1, 1]} : vector<8x64xf32> to vector<8x32xf32>
    %317 = vector.extract_strided_slice %315 {offsets = [0, 32], sizes = [8, 32], strides = [1, 1]} : vector<8x64xf32> to vector<8x32xf32>
    %318 = vector.extract_strided_slice %305 {offsets = [0, 64], sizes = [8, 32], strides = [1, 1]} : vector<8x96xf32> to vector<8x32xf32>
    %319 = vector.extract_strided_slice %307 {offsets = [0, 64], sizes = [8, 32], strides = [1, 1]} : vector<8x96xf32> to vector<8x32xf32>
    %320 = arith.addf %319, %252 : vector<8x32xf32>
    %321 = arith.mulf %316, %320 : vector<8x32xf32>
    %322 = arith.addf %318, %321 : vector<8x32xf32>
    %323 = math.tanh %322 : vector<8x32xf32>
    %cst_112 = arith.constant 1.000000e+00 : f32
    %324 = vector.broadcast %cst_112 : f32 to vector<8x32xf32>
    %325 = arith.subf %324, %317 : vector<8x32xf32>
    %326 = arith.mulf %325, %323 : vector<8x32xf32>
    %327 = arith.mulf %317, %303 : vector<8x32xf32>
    %328 = arith.addf %326, %327 : vector<8x32xf32>
    %c3_113 = arith.constant 3 : index
    %c0_114 = arith.constant 0 : index
    %c0_115 = arith.constant 0 : index
    %329 = vector.load %arg16[%c3_113, %c0_114, %c0_115] : memref<8x8x96xf32, #tpu.memory_space<vmem>>, vector<1x8x96xf32>
    %330 = vector.shape_cast %329 : vector<1x8x96xf32> to vector<8x96xf32>
    %331 = arith.truncf %328 : vector<8x32xf32> to vector<8x32xbf16>
    %cst_116 = arith.constant dense<0.000000e+00> : vector<8x96xf32>
    %332 = tpu.matmul %331, %249, %cst_116 {dimension_numbers = #tpu.dot_dimension_numbers<[1], [0], [0], [1], [0, 0, 1, 1], [], []>} : vector<8x32xbf16>, vector<32x96xbf16>, vector<8x96xf32> -> vector<8x96xf32>
    %333 = vector.extract_strided_slice %330 {offsets = [0, 0], sizes = [8, 64], strides = [1, 1]} : vector<8x96xf32> to vector<8x64xf32>
    %334 = vector.extract_strided_slice %332 {offsets = [0, 0], sizes = [8, 64], strides = [1, 1]} : vector<8x96xf32> to vector<8x64xf32>
    %335 = arith.addf %333, %334 : vector<8x64xf32>
    %336 = arith.negf %335 : vector<8x64xf32>
    %337 = math.exp %336 : vector<8x64xf32>
    %cst_117 = arith.constant 1.000000e+00 : f32
    %338 = vector.broadcast %cst_117 : f32 to vector<8x64xf32>
    %339 = arith.addf %338, %337 : vector<8x64xf32>
    %340 = arith.divf %338, %339 : vector<8x64xf32>
    %341 = vector.extract_strided_slice %340 {offsets = [0, 0], sizes = [8, 32], strides = [1, 1]} : vector<8x64xf32> to vector<8x32xf32>
    %342 = vector.extract_strided_slice %340 {offsets = [0, 32], sizes = [8, 32], strides = [1, 1]} : vector<8x64xf32> to vector<8x32xf32>
    %343 = vector.extract_strided_slice %330 {offsets = [0, 64], sizes = [8, 32], strides = [1, 1]} : vector<8x96xf32> to vector<8x32xf32>
    %344 = vector.extract_strided_slice %332 {offsets = [0, 64], sizes = [8, 32], strides = [1, 1]} : vector<8x96xf32> to vector<8x32xf32>
    %345 = arith.addf %344, %252 : vector<8x32xf32>
    %346 = arith.mulf %341, %345 : vector<8x32xf32>
    %347 = arith.addf %343, %346 : vector<8x32xf32>
    %348 = math.tanh %347 : vector<8x32xf32>
    %cst_118 = arith.constant 1.000000e+00 : f32
    %349 = vector.broadcast %cst_118 : f32 to vector<8x32xf32>
    %350 = arith.subf %349, %342 : vector<8x32xf32>
    %351 = arith.mulf %350, %348 : vector<8x32xf32>
    %352 = arith.mulf %342, %328 : vector<8x32xf32>
    %353 = arith.addf %351, %352 : vector<8x32xf32>
    %c4_119 = arith.constant 4 : index
    %c0_120 = arith.constant 0 : index
    %c0_121 = arith.constant 0 : index
    %354 = vector.load %arg16[%c4_119, %c0_120, %c0_121] : memref<8x8x96xf32, #tpu.memory_space<vmem>>, vector<1x8x96xf32>
    %355 = vector.shape_cast %354 : vector<1x8x96xf32> to vector<8x96xf32>
    %356 = arith.truncf %353 : vector<8x32xf32> to vector<8x32xbf16>
    %cst_122 = arith.constant dense<0.000000e+00> : vector<8x96xf32>
    %357 = tpu.matmul %356, %249, %cst_122 {dimension_numbers = #tpu.dot_dimension_numbers<[1], [0], [0], [1], [0, 0, 1, 1], [], []>} : vector<8x32xbf16>, vector<32x96xbf16>, vector<8x96xf32> -> vector<8x96xf32>
    %358 = vector.extract_strided_slice %355 {offsets = [0, 0], sizes = [8, 64], strides = [1, 1]} : vector<8x96xf32> to vector<8x64xf32>
    %359 = vector.extract_strided_slice %357 {offsets = [0, 0], sizes = [8, 64], strides = [1, 1]} : vector<8x96xf32> to vector<8x64xf32>
    %360 = arith.addf %358, %359 : vector<8x64xf32>
    %361 = arith.negf %360 : vector<8x64xf32>
    %362 = math.exp %361 : vector<8x64xf32>
    %cst_123 = arith.constant 1.000000e+00 : f32
    %363 = vector.broadcast %cst_123 : f32 to vector<8x64xf32>
    %364 = arith.addf %363, %362 : vector<8x64xf32>
    %365 = arith.divf %363, %364 : vector<8x64xf32>
    %366 = vector.extract_strided_slice %365 {offsets = [0, 0], sizes = [8, 32], strides = [1, 1]} : vector<8x64xf32> to vector<8x32xf32>
    %367 = vector.extract_strided_slice %365 {offsets = [0, 32], sizes = [8, 32], strides = [1, 1]} : vector<8x64xf32> to vector<8x32xf32>
    %368 = vector.extract_strided_slice %355 {offsets = [0, 64], sizes = [8, 32], strides = [1, 1]} : vector<8x96xf32> to vector<8x32xf32>
    %369 = vector.extract_strided_slice %357 {offsets = [0, 64], sizes = [8, 32], strides = [1, 1]} : vector<8x96xf32> to vector<8x32xf32>
    %370 = arith.addf %369, %252 : vector<8x32xf32>
    %371 = arith.mulf %366, %370 : vector<8x32xf32>
    %372 = arith.addf %368, %371 : vector<8x32xf32>
    %373 = math.tanh %372 : vector<8x32xf32>
    %cst_124 = arith.constant 1.000000e+00 : f32
    %374 = vector.broadcast %cst_124 : f32 to vector<8x32xf32>
    %375 = arith.subf %374, %367 : vector<8x32xf32>
    %376 = arith.mulf %375, %373 : vector<8x32xf32>
    %377 = arith.mulf %367, %353 : vector<8x32xf32>
    %378 = arith.addf %376, %377 : vector<8x32xf32>
    %c5_125 = arith.constant 5 : index
    %c0_126 = arith.constant 0 : index
    %c0_127 = arith.constant 0 : index
    %379 = vector.load %arg16[%c5_125, %c0_126, %c0_127] : memref<8x8x96xf32, #tpu.memory_space<vmem>>, vector<1x8x96xf32>
    %380 = vector.shape_cast %379 : vector<1x8x96xf32> to vector<8x96xf32>
    %381 = arith.truncf %378 : vector<8x32xf32> to vector<8x32xbf16>
    %cst_128 = arith.constant dense<0.000000e+00> : vector<8x96xf32>
    %382 = tpu.matmul %381, %249, %cst_128 {dimension_numbers = #tpu.dot_dimension_numbers<[1], [0], [0], [1], [0, 0, 1, 1], [], []>} : vector<8x32xbf16>, vector<32x96xbf16>, vector<8x96xf32> -> vector<8x96xf32>
    %383 = vector.extract_strided_slice %380 {offsets = [0, 0], sizes = [8, 64], strides = [1, 1]} : vector<8x96xf32> to vector<8x64xf32>
    %384 = vector.extract_strided_slice %382 {offsets = [0, 0], sizes = [8, 64], strides = [1, 1]} : vector<8x96xf32> to vector<8x64xf32>
    %385 = arith.addf %383, %384 : vector<8x64xf32>
    %386 = arith.negf %385 : vector<8x64xf32>
    %387 = math.exp %386 : vector<8x64xf32>
    %cst_129 = arith.constant 1.000000e+00 : f32
    %388 = vector.broadcast %cst_129 : f32 to vector<8x64xf32>
    %389 = arith.addf %388, %387 : vector<8x64xf32>
    %390 = arith.divf %388, %389 : vector<8x64xf32>
    %391 = vector.extract_strided_slice %390 {offsets = [0, 0], sizes = [8, 32], strides = [1, 1]} : vector<8x64xf32> to vector<8x32xf32>
    %392 = vector.extract_strided_slice %390 {offsets = [0, 32], sizes = [8, 32], strides = [1, 1]} : vector<8x64xf32> to vector<8x32xf32>
    %393 = vector.extract_strided_slice %380 {offsets = [0, 64], sizes = [8, 32], strides = [1, 1]} : vector<8x96xf32> to vector<8x32xf32>
    %394 = vector.extract_strided_slice %382 {offsets = [0, 64], sizes = [8, 32], strides = [1, 1]} : vector<8x96xf32> to vector<8x32xf32>
    %395 = arith.addf %394, %252 : vector<8x32xf32>
    %396 = arith.mulf %391, %395 : vector<8x32xf32>
    %397 = arith.addf %393, %396 : vector<8x32xf32>
    %398 = math.tanh %397 : vector<8x32xf32>
    %cst_130 = arith.constant 1.000000e+00 : f32
    %399 = vector.broadcast %cst_130 : f32 to vector<8x32xf32>
    %400 = arith.subf %399, %392 : vector<8x32xf32>
    %401 = arith.mulf %400, %398 : vector<8x32xf32>
    %402 = arith.mulf %392, %378 : vector<8x32xf32>
    %403 = arith.addf %401, %402 : vector<8x32xf32>
    %c6_131 = arith.constant 6 : index
    %c0_132 = arith.constant 0 : index
    %c0_133 = arith.constant 0 : index
    %404 = vector.load %arg16[%c6_131, %c0_132, %c0_133] : memref<8x8x96xf32, #tpu.memory_space<vmem>>, vector<1x8x96xf32>
    %405 = vector.shape_cast %404 : vector<1x8x96xf32> to vector<8x96xf32>
    %406 = arith.truncf %403 : vector<8x32xf32> to vector<8x32xbf16>
    %cst_134 = arith.constant dense<0.000000e+00> : vector<8x96xf32>
    %407 = tpu.matmul %406, %249, %cst_134 {dimension_numbers = #tpu.dot_dimension_numbers<[1], [0], [0], [1], [0, 0, 1, 1], [], []>} : vector<8x32xbf16>, vector<32x96xbf16>, vector<8x96xf32> -> vector<8x96xf32>
    %408 = vector.extract_strided_slice %405 {offsets = [0, 0], sizes = [8, 64], strides = [1, 1]} : vector<8x96xf32> to vector<8x64xf32>
    %409 = vector.extract_strided_slice %407 {offsets = [0, 0], sizes = [8, 64], strides = [1, 1]} : vector<8x96xf32> to vector<8x64xf32>
    %410 = arith.addf %408, %409 : vector<8x64xf32>
    %411 = arith.negf %410 : vector<8x64xf32>
    %412 = math.exp %411 : vector<8x64xf32>
    %cst_135 = arith.constant 1.000000e+00 : f32
    %413 = vector.broadcast %cst_135 : f32 to vector<8x64xf32>
    %414 = arith.addf %413, %412 : vector<8x64xf32>
    %415 = arith.divf %413, %414 : vector<8x64xf32>
    %416 = vector.extract_strided_slice %415 {offsets = [0, 0], sizes = [8, 32], strides = [1, 1]} : vector<8x64xf32> to vector<8x32xf32>
    %417 = vector.extract_strided_slice %415 {offsets = [0, 32], sizes = [8, 32], strides = [1, 1]} : vector<8x64xf32> to vector<8x32xf32>
    %418 = vector.extract_strided_slice %405 {offsets = [0, 64], sizes = [8, 32], strides = [1, 1]} : vector<8x96xf32> to vector<8x32xf32>
    %419 = vector.extract_strided_slice %407 {offsets = [0, 64], sizes = [8, 32], strides = [1, 1]} : vector<8x96xf32> to vector<8x32xf32>
    %420 = arith.addf %419, %252 : vector<8x32xf32>
    %421 = arith.mulf %416, %420 : vector<8x32xf32>
    %422 = arith.addf %418, %421 : vector<8x32xf32>
    %423 = math.tanh %422 : vector<8x32xf32>
    %cst_136 = arith.constant 1.000000e+00 : f32
    %424 = vector.broadcast %cst_136 : f32 to vector<8x32xf32>
    %425 = arith.subf %424, %417 : vector<8x32xf32>
    %426 = arith.mulf %425, %423 : vector<8x32xf32>
    %427 = arith.mulf %417, %403 : vector<8x32xf32>
    %428 = arith.addf %426, %427 : vector<8x32xf32>
    %c7_137 = arith.constant 7 : index
    %c0_138 = arith.constant 0 : index
    %c0_139 = arith.constant 0 : index
    %429 = vector.load %arg16[%c7_137, %c0_138, %c0_139] : memref<8x8x96xf32, #tpu.memory_space<vmem>>, vector<1x8x96xf32>
    %430 = vector.shape_cast %429 : vector<1x8x96xf32> to vector<8x96xf32>
    %431 = arith.truncf %428 : vector<8x32xf32> to vector<8x32xbf16>
    %cst_140 = arith.constant dense<0.000000e+00> : vector<8x96xf32>
    %432 = tpu.matmul %431, %249, %cst_140 {dimension_numbers = #tpu.dot_dimension_numbers<[1], [0], [0], [1], [0, 0, 1, 1], [], []>} : vector<8x32xbf16>, vector<32x96xbf16>, vector<8x96xf32> -> vector<8x96xf32>
    %433 = vector.extract_strided_slice %430 {offsets = [0, 0], sizes = [8, 64], strides = [1, 1]} : vector<8x96xf32> to vector<8x64xf32>
    %434 = vector.extract_strided_slice %432 {offsets = [0, 0], sizes = [8, 64], strides = [1, 1]} : vector<8x96xf32> to vector<8x64xf32>
    %435 = arith.addf %433, %434 : vector<8x64xf32>
    %436 = arith.negf %435 : vector<8x64xf32>
    %437 = math.exp %436 : vector<8x64xf32>
    %cst_141 = arith.constant 1.000000e+00 : f32
    %438 = vector.broadcast %cst_141 : f32 to vector<8x64xf32>
    %439 = arith.addf %438, %437 : vector<8x64xf32>
    %440 = arith.divf %438, %439 : vector<8x64xf32>
    %441 = vector.extract_strided_slice %440 {offsets = [0, 0], sizes = [8, 32], strides = [1, 1]} : vector<8x64xf32> to vector<8x32xf32>
    %442 = vector.extract_strided_slice %440 {offsets = [0, 32], sizes = [8, 32], strides = [1, 1]} : vector<8x64xf32> to vector<8x32xf32>
    %443 = vector.extract_strided_slice %430 {offsets = [0, 64], sizes = [8, 32], strides = [1, 1]} : vector<8x96xf32> to vector<8x32xf32>
    %444 = vector.extract_strided_slice %432 {offsets = [0, 64], sizes = [8, 32], strides = [1, 1]} : vector<8x96xf32> to vector<8x32xf32>
    %445 = arith.addf %444, %252 : vector<8x32xf32>
    %446 = arith.mulf %441, %445 : vector<8x32xf32>
    %447 = arith.addf %443, %446 : vector<8x32xf32>
    %448 = math.tanh %447 : vector<8x32xf32>
    %cst_142 = arith.constant 1.000000e+00 : f32
    %449 = vector.broadcast %cst_142 : f32 to vector<8x32xf32>
    %450 = arith.subf %449, %442 : vector<8x32xf32>
    %451 = arith.mulf %450, %448 : vector<8x32xf32>
    %452 = arith.mulf %442, %428 : vector<8x32xf32>
    %453 = arith.addf %451, %452 : vector<8x32xf32>
    %c0_143 = arith.constant 0 : index
    %c0_144 = arith.constant 0 : index
    %454 = vector.load %arg9[%c0_143, %c0_144] : memref<32x24xf32, #tpu.memory_space<vmem>>, vector<32x24xf32>
    %cst_145 = arith.constant dense<0.000000e+00> : vector<8x24xf32>
    %455 = tpu.matmul %453, %454, %cst_145 {dimension_numbers = #tpu.dot_dimension_numbers<[1], [0], [0], [1], [0, 0, 1, 1], [], []>} : vector<8x32xf32>, vector<32x24xf32>, vector<8x24xf32> -> vector<8x24xf32>
    %c0_146 = arith.constant 0 : index
    %c0_147 = arith.constant 0 : index
    %456 = vector.load %arg10[%c0_146, %c0_147] : memref<1x24xf32, #tpu.memory_space<vmem>>, vector<1x24xf32>
    %457 = vector.broadcast %456 : vector<1x24xf32> to vector<8x24xf32>
    %458 = arith.addf %455, %457 : vector<8x24xf32>
    %cst_148 = arith.constant 0.000000e+00 : f32
    %459 = vector.broadcast %cst_148 : f32 to vector<8x24xf32>
    %460 = arith.maximumf %458, %459 : vector<8x24xf32>
    %c0_149 = arith.constant 0 : index
    %c0_150 = arith.constant 0 : index
    %461 = vector.load %arg11[%c0_149, %c0_150] : memref<24x16xf32, #tpu.memory_space<vmem>>, vector<24x16xf32>
    %cst_151 = arith.constant dense<0.000000e+00> : vector<8x16xf32>
    %462 = tpu.matmul %460, %461, %cst_151 {dimension_numbers = #tpu.dot_dimension_numbers<[1], [0], [0], [1], [0, 0, 1, 1], [], []>} : vector<8x24xf32>, vector<24x16xf32>, vector<8x16xf32> -> vector<8x16xf32>
    %c0_152 = arith.constant 0 : index
    %c0_153 = arith.constant 0 : index
    %463 = vector.load %arg12[%c0_152, %c0_153] : memref<1x16xf32, #tpu.memory_space<vmem>>, vector<1x16xf32>
    %464 = vector.broadcast %463 : vector<1x16xf32> to vector<8x16xf32>
    %465 = arith.addf %462, %464 : vector<8x16xf32>
    %cst_154 = arith.constant 0.000000e+00 : f32
    %466 = vector.broadcast %cst_154 : f32 to vector<8x16xf32>
    %467 = arith.maximumf %465, %466 : vector<8x16xf32>
    %c0_155 = arith.constant 0 : index
    %c0_156 = arith.constant 0 : index
    %468 = vector.load %arg13[%c0_155, %c0_156] : memref<16x4xf32, #tpu.memory_space<vmem>>, vector<16x4xf32>
    %cst_157 = arith.constant dense<0.000000e+00> : vector<8x4xf32>
    %469 = tpu.matmul %467, %468, %cst_157 {dimension_numbers = #tpu.dot_dimension_numbers<[1], [0], [0], [1], [0, 0, 1, 1], [], []>} : vector<8x16xf32>, vector<16x4xf32>, vector<8x4xf32> -> vector<8x4xf32>
    %c0_158 = arith.constant 0 : index
    %c0_159 = arith.constant 0 : index
    %470 = vector.load %arg14[%c0_158, %c0_159] : memref<1x4xf32, #tpu.memory_space<vmem>>, vector<1x4xf32>
    %471 = vector.broadcast %470 : vector<1x4xf32> to vector<8x4xf32>
    %472 = arith.addf %469, %471 : vector<8x4xf32>
    %c0_160 = arith.constant 0 : index
    %c0_161 = arith.constant 0 : index
    %473 = vector.load %arg15[%c0_160, %c0_161] : memref<8x4xf32, #tpu.memory_space<vmem>>, vector<8x4xf32>
    tpu.vector_store %arg15[%c0_160, %c0_161], %472 {strides = array<i32>} : memref<8x4xf32, #tpu.memory_space<vmem>>, vector<8x4xf32>,
    return
  }
}

</mosaic_0001>

<bundles_post_ra>
// kernel: gru_mlp_forward.1
= control target key start
LH: loop header
LB: loop body
LE: loop exit
PB: predicated region body
PF: predicated region fallthrough
CT: control target
= control target key end

     0   :  { %vm81_vm0 = vcmask 1041408   ;;  %vm68_vm1 = vcmask 31744   ;;  %s1546_s29 = smov 64   ;;  %v1547_v8 = vmov 0   ;;  %vm114_vm2 = vcmask 785408   ;;  %s1979_s1 = inlined_call_operand.vmem [shape: bf16[4,96], index: 1, kind: input, shape index: {}]   ;;  %s1980_s2 = inlined_call_operand.vmem [shape: bf16[32,96], index: 2, kind: input, shape index: {}]   ;;  %s1981_s0 = inlined_call_operand.vmem [shape: f32[8,8,4], index: 0, kind: input, shape index: {}]   ;;  %s1982_s4 = inlined_call_operand.vmem [shape: f32[1,32], index: 4, kind: input, shape index: {}]   ;;  %s1983_s3 = inlined_call_operand.vmem [shape: f32[1,96], index: 3, kind: input, shape index: {}]   ;;  %s1984_s5 = inlined_call_operand.vmem [shape: bf16[32,96], index: 5, kind: input, shape index: {}]   ;;  %s1985_s8 = inlined_call_operand.vmem [shape: f32[1,32], index: 8, kind: input, shape index: {}]   ;;  %s1986_s7 = inlined_call_operand.vmem [shape: f32[1,96], index: 7, kind: input, shape index: {}]   ;;  %s1987_s6 = inlined_call_operand.vmem [shape: bf16[32,96], index: 6, kind: input, shape index: {}]   ;;  %s1988_s9 = inlined_call_operand.vmem [shape: f32[32,24], index: 9, kind: input, shape index: {}]   ;;  %s1989_s10 = inlined_call_operand.vmem [shape: f32[1,24], index: 10, kind: input, shape index: {}]   ;;  %s1990_s11 = inlined_call_operand.vmem [shape: f32[24,16], index: 11, kind: input, shape index: {}]   ;;  %s1991_s12 = inlined_call_operand.vmem [shape: f32[1,16], index: 12, kind: input, shape index: {}]   ;;  %s1992_s13 = inlined_call_operand.vmem [shape: f32[16,4], index: 13, kind: input, shape index: {}]   ;;  %s1993_s14 = inlined_call_operand.vmem [shape: f32[1,4], index: 14, kind: input, shape index: {}]   ;;  %s1994_s15 = inlined_call_operand.vmem [shape: f32[8,4], index: 15, kind: output, shape index: {}]  }
   0x1   :  { %v63_v0 = vld [vmem:[%s1979_s1] sm:$0x3]  ;;  %v1635_v1 = vld [vmem:[%s1980_s2 + $0x8] sm:$0xff]  ;;  %vm143_vm7 = vcmask 261120  }
   0x2   :  { %v51_v2 = vld [vmem:[%s1981_s0] sm:$0xff]  ;;  %v83_v3 = vsel %vm81_vm0, %v63_v0, 0  ;;  %v52_v4 = vld [vmem:[%s1981_s0 + $0x8] sm:$0xff]  ;;  %153 = vmatpush.bf16.msra.mxu1 %v1635_v1  ;;  %223 = vmatpush.bf16.msra.mxu2 %v1635_v1 }
   0x3   :  { %92 = vmatpush.bf16.msra.mxu0 %v83_v3  ;;  %v59_v5 = vpack.c.bf16 %v52_v4, %v51_v2  ;;  %v1647_v6 = vld [vmem:[%s1980_s2] sm:$0xff]  ;;  %291 = vmatpush.bf16.msra.mxu3 %v1635_v1  ;;  %v53_v4 = vld [vmem:[%s1981_s0 + $0x10] sm:$0xff] }
   0x4   :  { %v1443_v7 = vld [vmem:[%s1982_s4] ss:$0 sm:$0xff] }
   0x5   :  { %180 = vrot.lane.b32.xlu0 %v1443_v7, %s1546_s29  ;;  %v1671_v9 = vld [vmem:[%s1983_s3] ss:$0 sm:$0xff]  ;;  %s1548_s3 = smov 96  }
   0x6   :  { %1369 = vmatmul.msk.bf16.vlgmr.msra.gmra.mxu0 %vm68_vm1, %v59_v5  ;;  %154 = vmatpush.bf16.msra.mxu1 %v1647_v6  ;;  %v54_v5 = vld [vmem:[%s1981_s0 + $0x18] sm:$0xff] }
   0x7   :  { %224 = vmatpush.bf16.msra.mxu2 %v1647_v6  ;;  %292 = vmatpush.bf16.msra.mxu3 %v1647_v6 }
   0x9   :  { %155 = vmatmul.bf16.vlgmr.msra.gmra.mxu1 %v1547_v8 }
   0xa   :  { %359 = vmatpush.bf16.msrb.mxu1 %v1635_v1 }
   0xb   :  { %427 = vmatpush.bf16.msrb.mxu2 %v1635_v1  ;;  %495 = vmatpush.bf16.msrb.mxu3 %v1635_v1 }
   0xe   :  { %360 = vmatpush.bf16.msrb.mxu1 %v1647_v6 }
   0xf   :  { %428 = vmatpush.bf16.msrb.mxu2 %v1647_v6  ;;  %496 = vmatpush.bf16.msrb.mxu3 %v1647_v6 }
  0x12   :  { %563 = vmatpush.bf16.msra.mxu1 %v1635_v1 }
  0x16   :  { %564 = vmatpush.bf16.msra.mxu1 %v1647_v6 }
  0x77   :  { %v1674_v12 = vpop.permute.xlu0 %180 }
  0x83   :  { %v94_v10 = vpop.f32.mrf.mxu0 }
  0x84   :  { %v95_v11 = vadd.f32 %v1671_v9, %v94_v10 }
  0x86   :  { %115 = vst.msk [vmem:[#allocation2] sm:$0xff] %vm114_vm2, %v95_v11  ;;  %v156_v13 = vpop.f32.mrf.mxu1 }
  0x87   :  { %v183_v14 = vadd.f32 %v1674_v12, %v156_v13 }
  0x89   :  { %185 = vrot.lane.b32.xlu0 %v183_v14, %s1546_s29 }
  0x8b   :  { %v96_v15 = vpop.f32.mrf.mxu0 }
  0x8c   :  { %v97_v16 = vadd.f32 %v1671_v9, %v96_v15 }
  0x8d   :  { %v130_v18 = vld [vmem:[#allocation2] sm:$0xff] }
  0x8e   :  { %116 = vst.msk [vmem:[#allocation2 + $0x8] sm:$0xff] %vm114_vm2, %v97_v16  ;;  %v158_v17 = vpop.f32.mrf.mxu1  ;;  %v160_v19 = vadd.f32 %v156_v13, %v130_v18 }
  0x90   :  { %v1381_v20 = vmul.f32 -1.442695, %v160_v19 }
  0x92   :  { %1450 = vpow2.f32 %v1381_v20 }
  0x95   :  { %v209_v48 = vld [vmem:[#allocation2 + $0x8] sm:$0xff] }
  0x98   :  { %v1451_v21 = vpop.eup %1450 }
  0x99   :  { %v164_v22 = vadd.f32 1.0, %v1451_v21 }
  0x9b   :  { %1452 = vrcp.f32 %v164_v22  ;;  %v176_v28 = vand.u32 2147483648, %v164_v22  ;;  %vm170_vm4 = vweird.f32 %v164_v22  ;;  %v174_v29 = vand.u32 2147483647, %v164_v22 }
  0x9d   :  { %v177_v31 = vor.u32 1.1754944e-38, %v176_v28  ;;  %vm175_vm6 = vcmp.eq.f32.partialorder %v174_v29, 8.507059e+37 }
  0xa1   :  { %v1453_v23 = vpop.eup %1452 }
  0xa2   :  { %v166_v24 = vmul.f32 %v1453_v23, %v164_v22  ;;  %vm171_vm3 = vweird.f32 %v1453_v23 }
  0xa3   :  { %vm172_vm5 = vmor %vm170_vm4, %vm171_vm3 }
  0xa4   :  { %v167_v25 = vsub.f32 1.0, %v166_v24 }
  0xa6   :  { %v168_v26 = vmul.f32 %v1453_v23, %v167_v25 }
  0xa8   :  { %v169_v27 = vadd.f32 %v1453_v23, %v168_v26 }
  0xaa   :  { %v173_v30 = vsel %vm172_vm5, %v1453_v23, %v169_v27 }
  0xab   :  { %v178_v33 = vsel %vm175_vm6, %v177_v31, %v173_v30 }
  0xac   :  { %v195_v38 = vsub.f32 1.0, %v178_v33  ;;  %v201_v40 = vmul.f32 0.0, %v178_v33 }
  0xfb   :  { %v186_v32 = vpop.permute.xlu0 %185 }
  0xfc   :  { %v188_v34 = vmul.f32 %v186_v32, %v178_v33 }
  0xfe   :  { %190 = vrot.lane.b32.xlu1 %v188_v34, %s1546_s29 }
 0x170   :  { %v191_v35 = vpop.permute.xlu1 %190 }
 0x171   :  { %v193_v36 = vadd.f32 %v191_v35, %v130_v18 }
 0x173   :  { %1454 = vtanh.f32 %v193_v36 }
 0x179   :  { %v1455_v37 = vpop.eup %1454 }
 0x17a   :  { %197 = vrot.lane.b32.xlu1 %v1455_v37, %s1548_s3 }
 0x1ec   :  { %v198_v39 = vpop.permute.xlu1 %197 }
 0x1ed   :  { %v200_v41 = vmul.f32 %v198_v39, %v195_v38 }
 0x1ef   :  { %v1683_v42 = vadd.f32 %v201_v40, %v200_v41 }
 0x1f1   :  { %v210_v43 = vpack.c.bf16 %v1683_v42, %v1683_v42 }
 0x1f3   :  { %212 = vrot.lane.b32.xlu2 %v210_v43, %s1548_s3 }
 0x24d   :  { %v213_v44 = vpop.permute.xlu2 %212 }
 0x24e   :  { %1382 = vmatmul.msk.bf16.vlgmr.msra.gmra.mxu2 %vm143_vm7, %v213_v44 }
 0x24f   :  { %631 = vmatpush.bf16.msra.mxu2 %v1635_v1 }
 0x253   :  { %632 = vmatpush.bf16.msra.mxu2 %v1647_v6  ;;  %v60_v6 = vpack.c.bf16 %v54_v5, %v53_v4 }
 0x255   :  { %1370 = vmatmul.msk.bf16.gmra.mxu0 %vm68_vm1, %v60_v6 }
 0x2d1   :  { %v226_v45 = vpop.f32.mrf.mxu2 }
 0x2d2   :  { %v250_v46 = vadd.f32 %v226_v45, %v1674_v12  ;;  %v230_v49 = vadd.f32 %v226_v45, %v209_v48  ;;  %v99_v17 = vpop.f32.mrf.mxu0 }
 0x2d3   :  { %v100_v18 = vadd.f32 %v1671_v9, %v99_v17 }
 0x2d4   :  { %252 = vrot.lane.b32.xlu2 %v250_v46, %s1546_s29  ;;  %v1383_v50 = vmul.f32 -1.442695, %v230_v49 }
 0x2d5   :  { %117 = vst.msk [vmem:[#allocation2 + $0x10] sm:$0xff] %vm114_vm2, %v100_v18 }
 0x2d6   :  { %1456 = vpow2.f32 %v1383_v50 }
 0x2d9   :  { %v228_v47 = vpop.f32.mrf.mxu2 }
 0x2da   :  { %v101_v19 = vpop.f32.mrf.mxu0 }
 0x2db   :  { %v102_v20 = vadd.f32 %v1671_v9, %v101_v19 }
 0x2dc   :  { %v1457_v51 = vpop.eup %1456  ;;  %v277_v24 = vld [vmem:[#allocation2 + $0x10] sm:$0xff] }
 0x2dd   :  { %v234_v52 = vadd.f32 1.0, %v1457_v51  ;;  %118 = vst.msk [vmem:[#allocation2 + $0x18] sm:$0xff] %vm114_vm2, %v102_v20 }
 0x2df   :  { %1458 = vrcp.f32 %v234_v52  ;;  %v246_v58 = vand.u32 2147483648, %v234_v52  ;;  %vm240_vm9 = vweird.f32 %v234_v52  ;;  %v244_v59 = vand.u32 2147483647, %v234_v52 }
 0x2e1   :  { %v247_v61 = vor.u32 1.1754944e-38, %v246_v58  ;;  %vm245_vm11 = vcmp.eq.f32.partialorder %v244_v59, 8.507059e+37 }
 0x2e5   :  { %v1459_v53 = vpop.eup %1458 }
 0x2e6   :  { %v236_v54 = vmul.f32 %v1459_v53, %v234_v52  ;;  %vm241_vm8 = vweird.f32 %v1459_v53 }
 0x2e7   :  { %vm242_vm10 = vmor %vm240_vm9, %vm241_vm8 }
 0x2e8   :  { %v237_v55 = vsub.f32 1.0, %v236_v54 }
 0x2ea   :  { %v238_v56 = vmul.f32 %v1459_v53, %v237_v55  ;;  %v345_v55 = vld [vmem:[#allocation2 + $0x18] sm:$0xff] }
 0x2ec   :  { %v239_v57 = vadd.f32 %v1459_v53, %v238_v56 }
 0x2ee   :  { %v243_v60 = vsel %vm242_vm10, %v1459_v53, %v239_v57 }
 0x2ef   :  { %v248_v63 = vsel %vm245_vm11, %v247_v61, %v243_v60 }
 0x2f0   :  { %v262_v7 = vsub.f32 1.0, %v248_v63  ;;  %v268_v11 = vmul.f32 %v248_v63, %v1683_v42 }
 0x32e   :  { %v253_v62 = vpop.permute.xlu2 %252 }
 0x32f   :  { %v255_v0 = vmul.f32 %v253_v62, %v248_v63 }
 0x331   :  { %257 = vrot.lane.b32.xlu0 %v255_v0, %s1546_s29 }
 0x3a3   :  { %v258_v1 = vpop.permute.xlu0 %257 }
 0x3a4   :  { %v260_v2 = vadd.f32 %v258_v1, %v209_v48 }
 0x3a6   :  { %1460 = vtanh.f32 %v260_v2 }
 0x3ac   :  { %v1461_v3 = vpop.eup %1460 }
 0x3ad   :  { %264 = vrot.lane.b32.xlu1 %v1461_v3, %s1548_s3 }
 0x41f   :  { %v265_v10 = vpop.permute.xlu1 %264 }
 0x420   :  { %v267_v13 = vmul.f32 %v265_v10, %v262_v7 }
 0x422   :  { %v1703_v14 = vadd.f32 %v268_v11, %v267_v13 }
 0x424   :  { %v278_v15 = vpack.c.bf16 %v1703_v14, %v1703_v14 }
 0x426   :  { %280 = vrot.lane.b32.xlu2 %v278_v15, %s1548_s3  ;;  %v55_v15 = vld [vmem:[%s1981_s0 + $0x20] sm:$0xff] }
 0x480   :  { %v281_v16 = vpop.permute.xlu2 %280 }
 0x481   :  { %1384 = vmatmul.msk.bf16.vlgmr.msra.gmra.mxu3 %vm143_vm7, %v281_v16  ;;  %v56_v16 = vld [vmem:[%s1981_s0 + $0x28] sm:$0xff] }
 0x482   :  { %v61_v17 = vpack.c.bf16 %v56_v16, %v55_v15 }
 0x484   :  { %1371 = vmatmul.msk.bf16.gmra.mxu0 %vm68_vm1, %v61_v17 }
 0x504   :  { %v294_v21 = vpop.f32.mrf.mxu3 }
 0x505   :  { %v318_v22 = vadd.f32 %v294_v21, %v1674_v12  ;;  %v298_v25 = vadd.f32 %v294_v21, %v277_v24 }
 0x507   :  { %320 = vrot.lane.b32.xlu0 %v318_v22, %s1546_s29  ;;  %v1385_v26 = vmul.f32 -1.442695, %v298_v25 }
 0x509   :  { %1462 = vpow2.f32 %v1385_v26 }
 0x50c   :  { %v296_v23 = vpop.f32.mrf.mxu3 }
 0x50f   :  { %v1463_v27 = vpop.eup %1462 }
 0x510   :  { %v302_v28 = vadd.f32 1.0, %v1463_v27 }
 0x512   :  { %1464 = vrcp.f32 %v302_v28  ;;  %v314_v34 = vand.u32 2147483648, %v302_v28  ;;  %vm308_vm13 = vweird.f32 %v302_v28  ;;  %v312_v35 = vand.u32 2147483647, %v302_v28 }
 0x514   :  { %v315_v37 = vor.u32 1.1754944e-38, %v314_v34  ;;  %vm313_vm15 = vcmp.eq.f32.partialorder %v312_v35, 8.507059e+37 }
 0x518   :  { %v1465_v29 = vpop.eup %1464 }
 0x519   :  { %v304_v30 = vmul.f32 %v1465_v29, %v302_v28  ;;  %vm309_vm12 = vweird.f32 %v1465_v29 }
 0x51a   :  { %vm310_vm14 = vmor %vm308_vm13, %vm309_vm12 }
 0x51b   :  { %v305_v31 = vsub.f32 1.0, %v304_v30 }
 0x51d   :  { %v306_v32 = vmul.f32 %v1465_v29, %v305_v31 }
 0x51f   :  { %v307_v33 = vadd.f32 %v1465_v29, %v306_v32 }
 0x521   :  { %v311_v36 = vsel %vm310_vm14, %v1465_v29, %v307_v33 }
 0x522   :  { %v316_v39 = vsel %vm313_vm15, %v315_v37, %v311_v36 }
 0x523   :  { %v330_v45 = vsub.f32 1.0, %v316_v39  ;;  %v336_v47 = vmul.f32 %v316_v39, %v1703_v14 }
 0x579   :  { %v321_v38 = vpop.permute.xlu0 %320 }
 0x57a   :  { %v323_v40 = vmul.f32 %v321_v38, %v316_v39 }
 0x57c   :  { %325 = vrot.lane.b32.xlu1 %v323_v40, %s1546_s29 }
 0x5ee   :  { %v326_v41 = vpop.permute.xlu1 %325 }
 0x5ef   :  { %v328_v43 = vadd.f32 %v326_v41, %v277_v24  ;;  %v104_v24 = vpop.f32.mrf.mxu0 }
 0x5f0   :  { %v105_v25 = vadd.f32 %v1671_v9, %v104_v24 }
 0x5f1   :  { %1466 = vtanh.f32 %v328_v43 }
 0x5f2   :  { %119 = vst.msk [vmem:[#allocation2 + $0x20] sm:$0xff] %vm114_vm2, %v105_v25 }
 0x5f7   :  { %v1467_v44 = vpop.eup %1466  ;;  %v106_v27 = vpop.f32.mrf.mxu0 }
 0x5f8   :  { %332 = vrot.lane.b32.xlu2 %v1467_v44, %s1548_s3  ;;  %v107_v28 = vadd.f32 %v1671_v9, %v106_v27  ;;  %v57_v27 = vld [vmem:[%s1981_s0 + $0x30] sm:$0xff] }
 0x5f9   :  { %v413_v32 = vld [vmem:[#allocation2 + $0x20] sm:$0xff] }
 0x5fa   :  { %120 = vst.msk [vmem:[#allocation2 + $0x28] sm:$0xff] %vm114_vm2, %v107_v28  ;;  %v58_v28 = vld [vmem:[%s1981_s0 + $0x38] sm:$0xff] }
 0x652   :  { %v333_v46 = vpop.permute.xlu2 %332 }
 0x653   :  { %v335_v48 = vmul.f32 %v333_v46, %v330_v45 }
 0x655   :  { %v1718_v49 = vadd.f32 %v336_v47, %v335_v48 }
 0x657   :  { %v346_v50 = vpack.c.bf16 %v1718_v49, %v1718_v49 }
 0x659   :  { %348 = vrot.lane.b32.xlu0 %v346_v50, %s1548_s3 }
 0x6cb   :  { %v349_v51 = vpop.permute.xlu0 %348 }
 0x6cc   :  { %1386 = vmatmul.msk.bf16.vlgmr.msrb.gmra.mxu1 %vm143_vm7, %v349_v51 }
 0x749   :  { %v362_v52 = vpop.f32.mrf.mxu1 }
 0x74a   :  { %v386_v53 = vadd.f32 %v362_v52, %v1674_v12  ;;  %v366_v56 = vadd.f32 %v362_v52, %v345_v55 }
 0x74c   :  { %388 = vrot.lane.b32.xlu1 %v386_v53, %s1546_s29  ;;  %v1387_v57 = vmul.f32 -1.442695, %v366_v56 }
 0x74e   :  { %1468 = vpow2.f32 %v1387_v57 }
 0x751   :  { %v364_v54 = vpop.f32.mrf.mxu1 }
 0x754   :  { %v1469_v58 = vpop.eup %1468 }
 0x755   :  { %v370_v59 = vadd.f32 1.0, %v1469_v58 }
 0x757   :  { %1470 = vrcp.f32 %v370_v59  ;;  %v382_v1 = vand.u32 2147483648, %v370_v59  ;;  %vm376_vm3 = vweird.f32 %v370_v59  ;;  %v380_v2 = vand.u32 2147483647, %v370_v59 }
 0x759   :  { %v383_v4 = vor.u32 1.1754944e-38, %v382_v1  ;;  %vm381_vm5 = vcmp.eq.f32.partialorder %v380_v2, 8.507059e+37 }
 0x75d   :  { %v1471_v60 = vpop.eup %1470 }
 0x75e   :  { %v372_v61 = vmul.f32 %v1471_v60, %v370_v59  ;;  %vm377_vm0 = vweird.f32 %v1471_v60 }
 0x75f   :  { %vm378_vm4 = vmor %vm376_vm3, %vm377_vm0 }
 0x760   :  { %v373_v62 = vsub.f32 1.0, %v372_v61 }
 0x762   :  { %v374_v63 = vmul.f32 %v1471_v60, %v373_v62 }
 0x764   :  { %v375_v0 = vadd.f32 %v1471_v60, %v374_v63 }
 0x766   :  { %v379_v3 = vsel %vm378_vm4, %v1471_v60, %v375_v0  ;;  %v481_v0 = vld [vmem:[#allocation2 + $0x28] sm:$0xff] }
 0x767   :  { %v384_v6 = vsel %vm381_vm5, %v383_v4, %v379_v3 }
 0x768   :  { %v398_v18 = vsub.f32 1.0, %v384_v6  ;;  %v404_v20 = vmul.f32 %v384_v6, %v1718_v49 }
 0x7be   :  { %v389_v5 = vpop.permute.xlu1 %388 }
 0x7bf   :  { %v391_v7 = vmul.f32 %v389_v5, %v384_v6 }
 0x7c1   :  { %393 = vrot.lane.b32.xlu2 %v391_v7, %s1546_s29 }
 0x81b   :  { %v394_v10 = vpop.permute.xlu2 %393 }
 0x81c   :  { %v396_v11 = vadd.f32 %v394_v10, %v345_v55 }
 0x81e   :  { %1472 = vtanh.f32 %v396_v11 }
 0x824   :  { %v1473_v13 = vpop.eup %1472 }
 0x825   :  { %400 = vrot.lane.b32.xlu0 %v1473_v13, %s1548_s3 }
 0x897   :  { %v401_v19 = vpop.permute.xlu0 %400 }
 0x898   :  { %v403_v21 = vmul.f32 %v401_v19, %v398_v18 }
 0x89a   :  { %v1736_v22 = vadd.f32 %v404_v20, %v403_v21 }
 0x89c   :  { %v414_v23 = vpack.c.bf16 %v1736_v22, %v1736_v22 }
 0x89e   :  { %416 = vrot.lane.b32.xlu1 %v414_v23, %s1548_s3 }
 0x910   :  { %v417_v26 = vpop.permute.xlu1 %416 }
 0x911   :  { %1388 = vmatmul.msk.bf16.vlgmr.msrb.gmra.mxu2 %vm143_vm7, %v417_v26  ;;  %v1437_v26 = vld [vmem:[%s1984_s5 + $0x8] sm:$0xff] }
 0x912   :  { %734 = vmatpush.bf16.msra.mxu3 %v1437_v26 }
 0x994   :  { %v430_v29 = vpop.f32.mrf.mxu2 }
 0x995   :  { %v454_v30 = vadd.f32 %v430_v29, %v1674_v12  ;;  %v434_v33 = vadd.f32 %v430_v29, %v413_v32  ;;  %v62_v29 = vpack.c.bf16 %v58_v28, %v57_v27 }
 0x997   :  { %456 = vrot.lane.b32.xlu2 %v454_v30, %s1546_s29  ;;  %v1389_v34 = vmul.f32 -1.442695, %v434_v33  ;;  %1372 = vmatmul.msk.bf16.gmra.mxu0 %vm68_vm1, %v62_v29 }
 0x999   :  { %1474 = vpow2.f32 %v1389_v34 }
 0x99c   :  { %v432_v31 = vpop.f32.mrf.mxu2 }
 0x99f   :  { %v1475_v35 = vpop.eup %1474 }
 0x9a0   :  { %v438_v36 = vadd.f32 1.0, %v1475_v35 }
 0x9a2   :  { %1476 = vrcp.f32 %v438_v36  ;;  %v450_v43 = vand.u32 2147483648, %v438_v36  ;;  %vm444_vm8 = vweird.f32 %v438_v36  ;;  %v448_v44 = vand.u32 2147483647, %v438_v36 }
 0x9a4   :  { %v451_v46 = vor.u32 1.1754944e-38, %v450_v43  ;;  %vm449_vm10 = vcmp.eq.f32.partialorder %v448_v44, 8.507059e+37 }
 0x9a8   :  { %v1477_v37 = vpop.eup %1476 }
 0x9a9   :  { %v440_v38 = vmul.f32 %v1477_v37, %v438_v36  ;;  %vm445_vm6 = vweird.f32 %v1477_v37 }
 0x9aa   :  { %vm446_vm9 = vmor %vm444_vm8, %vm445_vm6 }
 0x9ab   :  { %v441_v39 = vsub.f32 1.0, %v440_v38 }
 0x9ad   :  { %v442_v40 = vmul.f32 %v1477_v37, %v441_v39  ;;  %v1790_v39 = vld [vmem:[%s1987_s6 + $0x8] sm:$0xff] }
 0x9ae   :  { %791 = vmatpush.bf16.msrb.mxu1 %v1790_v39  ;;  %855 = vmatpush.bf16.msrb.mxu2 %v1790_v39 }
 0x9af   :  { %v443_v41 = vadd.f32 %v1477_v37, %v442_v40  ;;  %v1796_v40 = vld [vmem:[%s1987_s6] sm:$0xff]  ;;  %916 = vmatpush.bf16.msrb.mxu0 %v1790_v39 }
 0x9b1   :  { %v447_v45 = vsel %vm446_vm9, %v1477_v37, %v443_v41  ;;  %v1445_v41 = vld [vmem:[%s1985_s8] ss:$0 sm:$0xff] }
 0x9b2   :  { %v452_v48 = vsel %vm449_vm10, %v451_v46, %v447_v45  ;;  %792 = vmatpush.bf16.msrb.mxu1 %v1796_v40  ;;  %856 = vmatpush.bf16.msrb.mxu2 %v1796_v40  ;;  %v1820_v46 = vld [vmem:[%s1986_s7] ss:$0 sm:$0xff] }
 0x9b3   :  { %v466_v54 = vsub.f32 1.0, %v452_v48  ;;  %v472_v56 = vmul.f32 %v452_v48, %v1736_v22  ;;  %917 = vmatpush.bf16.msrb.mxu0 %v1796_v40 }
 0x9b7   :  { %1099 = vmatpush.bf16.msra.mxu0 %v1790_v39 }
 0x9bb   :  { %1100 = vmatpush.bf16.msra.mxu0 %v1796_v40 }
 0x9f1   :  { %v457_v47 = vpop.permute.xlu2 %456 }
 0x9f2   :  { %v459_v50 = vmul.f32 %v457_v47, %v452_v48 }
 0x9f4   :  { %461 = vrot.lane.b32.xlu0 %v459_v50, %s1546_s29 }
 0xa14   :  { %v109_v44 = vpop.f32.mrf.mxu0 }
 0xa15   :  { %v110_v45 = vadd.f32 %v1671_v9, %v109_v44 }
 0xa17   :  { %121 = vst.msk [vmem:[#allocation2 + $0x30] sm:$0xff] %vm114_vm2, %v110_v45 }
 0xa66   :  { %v462_v51 = vpop.permute.xlu0 %461 }
 0xa67   :  { %v464_v52 = vadd.f32 %v462_v51, %v413_v32 }
 0xa69   :  { %1478 = vtanh.f32 %v464_v52 }
 0xa6f   :  { %v1479_v53 = vpop.eup %1478 }
 0xa70   :  { %468 = vrot.lane.b32.xlu1 %v1479_v53, %s1548_s3 }
 0xae2   :  { %v469_v55 = vpop.permute.xlu1 %468 }
 0xae3   :  { %v471_v57 = vmul.f32 %v469_v55, %v466_v54 }
 0xae5   :  { %v1751_v58 = vadd.f32 %v472_v56, %v471_v57 }
 0xae7   :  { %v482_v59 = vpack.c.bf16 %v1751_v58, %v1751_v58 }
 0xae9   :  { %484 = vrot.lane.b32.xlu2 %v482_v59, %s1548_s3 }
 0xb43   :  { %v485_v60 = vpop.permute.xlu2 %484 }
 0xb44   :  { %1390 = vmatmul.msk.bf16.vlgmr.msrb.gmra.mxu3 %vm143_vm7, %v485_v60 }
 0xbc7   :  { %v498_v61 = vpop.f32.mrf.mxu3 }
 0xbc8   :  { %v522_v62 = vadd.f32 %v498_v61, %v1674_v12  ;;  %v502_v1 = vadd.f32 %v498_v61, %v481_v0 }
 0xbca   :  { %524 = vrot.lane.b32.xlu0 %v522_v62, %s1546_s29  ;;  %v1391_v2 = vmul.f32 -1.442695, %v502_v1 }
 0xbcc   :  { %1480 = vpow2.f32 %v1391_v2 }
 0xbcf   :  { %v500_v63 = vpop.f32.mrf.mxu3 }
 0xbd2   :  { %v1481_v3 = vpop.eup %1480 }
 0xbd3   :  { %v506_v4 = vadd.f32 1.0, %v1481_v3 }
 0xbd5   :  { %1482 = vrcp.f32 %v506_v4  ;;  %v518_v13 = vand.u32 2147483648, %v506_v4  ;;  %vm512_vm12 = vweird.f32 %v506_v4  ;;  %v516_v15 = vand.u32 2147483647, %v506_v4 }
 0xbd7   :  { %v519_v17 = vor.u32 1.1754944e-38, %v518_v13  ;;  %vm517_vm14 = vcmp.eq.f32.partialorder %v516_v15, 8.507059e+37 }
 0xbdb   :  { %v1483_v5 = vpop.eup %1482 }
 0xbdc   :  { %v508_v6 = vmul.f32 %v1483_v5, %v506_v4  ;;  %vm513_vm11 = vweird.f32 %v1483_v5 }
 0xbdd   :  { %vm514_vm13 = vmor %vm512_vm12, %vm513_vm11 }
 0xbde   :  { %v509_v7 = vsub.f32 1.0, %v508_v6 }
 0xbe0   :  { %v510_v10 = vmul.f32 %v1483_v5, %v509_v7 }
 0xbe2   :  { %v511_v11 = vadd.f32 %v1483_v5, %v510_v10 }
 0xbe4   :  { %v515_v16 = vsel %vm514_vm13, %v1483_v5, %v511_v11 }
 0xbe5   :  { %v520_v19 = vsel %vm517_vm14, %v519_v17, %v515_v16 }
 0xbe6   :  { %v540_v31 = vmul.f32 %v520_v19, %v1751_v58 }
 0xc3c   :  { %v525_v18 = vpop.permute.xlu0 %524 }
 0xc3d   :  { %v527_v20 = vmul.f32 %v525_v18, %v520_v19 }
 0xc3f   :  { %529 = vrot.lane.b32.xlu1 %v527_v20, %s1546_s29 }
 0xc47   :  { %204 = vrot.lane.b32.xlu1 %v1683_v42, %s1548_s3  ;;  %v1436_v42 = vld [vmem:[%s1984_s5] sm:$0xff] }
 0xc48   :  { %735 = vmatpush.bf16.msra.mxu3 %v1436_v42 }
 0xcb1   :  { %v530_v21 = vpop.permute.xlu1 %529 }
 0xcb2   :  { %v532_v23 = vadd.f32 %v530_v21, %v481_v0 }
 0xcb4   :  { %1484 = vtanh.f32 %v532_v23 }
 0xcb9   :  { %v205_v24 = vpop.permute.xlu1 %204 }
 0xcba   :  { %v1485_v25 = vpop.eup %1484  ;;  %207 = vst.msk [vmem:[#allocation3] sm:$0xff] %vm143_vm7, %v205_v24 }
 0xcbb   :  { %536 = vrot.lane.b32.xlu2 %v1485_v25, %s1548_s3 }
 0xcc1   :  { %v684_v36 = vld [vmem:[#allocation3] sm:$0xff] }
 0xcc3   :  { %271 = vrot.lane.b32.xlu2 %v1703_v14, %s1548_s3  ;;  %v534_v14 = vsub.f32 1.0, %v520_v19 }
 0xd15   :  { %v537_v30 = vpop.permute.xlu2 %536 }
 0xd16   :  { %v539_v32 = vmul.f32 %v537_v30, %v534_v14 }
 0xd18   :  { %v1780_v33 = vadd.f32 %v540_v31, %v539_v32 }
 0xd1a   :  { %v550_v34 = vpack.c.bf16 %v1780_v33, %v1780_v33 }
 0xd1c   :  { %552 = vrot.lane.b32.xlu0 %v550_v34, %s1548_s3 }
 0xd1d   :  { %v272_v35 = vpop.permute.xlu2 %271 }
 0xd1e   :  { %275 = vst.msk [vmem:[#allocation3 + $0x8] sm:$0xff] %vm143_vm7, %v272_v35 }
 0xd24   :  { %818 = vrot.lane.b32.xlu0 %v1445_v41, %s1546_s29 }
 0xd25   :  { %v685_v37 = vld [vmem:[#allocation3 + $0x8] sm:$0xff] }
 0xd26   :  { %v692_v38 = vpack.c.bf16 %v685_v37, %v684_v36 }
 0xd28   :  { %1404 = vmatmul.msk.bf16.vlgmr.msra.gmra.mxu3 %vm143_vm7, %v692_v38 }
 0xd8e   :  { %v553_v43 = vpop.permute.xlu0 %552 }
 0xd8f   :  { %1392 = vmatmul.msk.bf16.vlgmr.msra.gmra.mxu1 %vm143_vm7, %v553_v43 }
 0xd90   :  { %977 = vmatpush.bf16.msra.mxu1 %v1790_v39 }
 0xd94   :  { %978 = vmatpush.bf16.msra.mxu1 %v1796_v40 }
 0xd96   :  { %v1830_v56 = vpop.permute.xlu0 %818 }
 0xd9f   :  { %793 = vmatmul.bf16.vlgmr.msrb.gmra.mxu1 %v1547_v8  ;;  %v111_v8 = vpop.f32.mrf.mxu0 }
 0xda0   :  { %1160 = vmatpush.bf16.msrb.mxu1 %v1790_v39  ;;  %v112_v52 = vadd.f32 %v1671_v9, %v111_v8  ;;  %v549_v9 = vld [vmem:[#allocation2 + $0x30] sm:$0xff] }
 0xda2   :  { %122 = vst.msk [vmem:[#allocation2 + $0x38] sm:$0xff] %vm114_vm2, %v112_v52 }
 0xda4   :  { %1161 = vmatpush.bf16.msrb.mxu1 %v1796_v40 }
 0xdab   :  { %v737_v47 = vpop.f32.mrf.mxu3 }
 0xdac   :  { %v738_v48 = vadd.f32 %v1820_v46, %v737_v47 }
 0xdae   :  { %757 = vst.msk [vmem:[#allocation2] sm:$0xff] %vm114_vm2, %v738_v48 }
 0xdb3   :  { %v739_v50 = vpop.f32.mrf.mxu3 }
 0xdb4   :  { %v740_v51 = vadd.f32 %v1820_v46, %v739_v50 }
 0xdb5   :  { %v772_v61 = vld [vmem:[#allocation2] sm:$0xff] }
 0xdb6   :  { %758 = vst.msk [vmem:[#allocation2 + $0x8] sm:$0xff] %vm114_vm2, %v740_v51 }
 0xe0c   :  { %v566_v53 = vpop.f32.mrf.mxu1 }
 0xe0d   :  { %v590_v54 = vadd.f32 %v566_v53, %v1674_v12  ;;  %v570_v0 = vadd.f32 %v566_v53, %v549_v9 }
 0xe0f   :  { %592 = vrot.lane.b32.xlu1 %v590_v54, %s1546_s29  ;;  %v1393_v1 = vmul.f32 -1.442695, %v570_v0  ;;  %v841_v0 = vld [vmem:[#allocation2 + $0x8] sm:$0xff] }
 0xe14   :  { %v568_v55 = vpop.f32.mrf.mxu1 }
 0xe1c   :  { %v794_v57 = vpop.f32.mrf.mxu1 }
 0xe1d   :  { %v821_v59 = vadd.f32 %v1830_v56, %v794_v57  ;;  %v798_v62 = vadd.f32 %v794_v57, %v772_v61 }
 0xe1f   :  { %823 = vrot.lane.b32.xlu2 %v821_v59, %s1546_s29  ;;  %v1416_v63 = vmul.f32 -1.442695, %v798_v62 }
 0xe21   :  { %1486 = vpow2.f32 %v1416_v63 }
 0xe22   :  { %1488 = vpow2.f32 %v1393_v1 }
 0xe24   :  { %v796_v60 = vpop.f32.mrf.mxu1 }
 0xe27   :  { %v1487_v2 = vpop.eup %1486 }
 0xe28   :  { %v802_v3 = vadd.f32 1.0, %v1487_v2  ;;  %v1489_v4 = vpop.eup %1488 }
 0xe29   :  { %v574_v5 = vadd.f32 1.0, %v1489_v4 }
 0xe2a   :  { %1490 = vrcp.f32 %v802_v3  ;;  %v814_v18 = vand.u32 2147483648, %v802_v3  ;;  %vm808_vm0 = vweird.f32 %v802_v3  ;;  %v812_v19 = vand.u32 2147483647, %v802_v3 }
 0xe2b   :  { %1492 = vrcp.f32 %v574_v5  ;;  %v586_v27 = vand.u32 2147483648, %v574_v5  ;;  %vm580_vm6 = vweird.f32 %v574_v5  ;;  %v584_v28 = vand.u32 2147483647, %v574_v5 }
 0xe2c   :  { %v815_v23 = vor.u32 1.1754944e-38, %v814_v18  ;;  %vm813_vm4 = vcmp.eq.f32.partialorder %v812_v19, 8.507059e+37 }
 0xe2d   :  { %v587_v14 = vor.u32 1.1754944e-38, %v586_v27  ;;  %vm585_vm9 = vcmp.eq.f32.partialorder %v584_v28, 8.507059e+37 }
 0xe30   :  { %v1491_v6 = vpop.eup %1490 }
 0xe31   :  { %v804_v7 = vmul.f32 %v1491_v6, %v802_v3  ;;  %v1493_v11 = vpop.eup %1492  ;;  %vm809_vm15 = vweird.f32 %v1491_v6 }
 0xe32   :  { %v576_v15 = vmul.f32 %v1493_v11, %v574_v5  ;;  %vm810_vm3 = vmor %vm808_vm0, %vm809_vm15  ;;  %vm581_vm5 = vweird.f32 %v1493_v11 }
 0xe33   :  { %v805_v10 = vsub.f32 1.0, %v804_v7  ;;  %vm582_vm8 = vmor %vm580_vm6, %vm581_vm5 }
 0xe34   :  { %v577_v17 = vsub.f32 1.0, %v576_v15 }
 0xe35   :  { %v806_v13 = vmul.f32 %v1491_v6, %v805_v10 }
 0xe36   :  { %v578_v21 = vmul.f32 %v1493_v11, %v577_v17 }
 0xe37   :  { %v807_v16 = vadd.f32 %v1491_v6, %v806_v13 }
 0xe38   :  { %v579_v42 = vadd.f32 %v1493_v11, %v578_v21 }
 0xe39   :  { %v811_v20 = vsel %vm810_vm3, %v1491_v6, %v807_v16 }
 0xe3a   :  { %v816_v25 = vsel %vm813_vm4, %v815_v23, %v811_v20  ;;  %v583_v29 = vsel %vm582_vm8, %v1493_v11, %v579_v42 }
 0xe3b   :  { %v588_v30 = vsel %vm585_vm9, %v587_v14, %v583_v29  ;;  %v833_v51 = vsub.f32 1.0, %v816_v25  ;;  %v839_v52 = vmul.f32 0.0, %v816_v25 }
 0xe3c   :  { %v602_v43 = vsub.f32 1.0, %v588_v30  ;;  %v608_v45 = vmul.f32 %v588_v30, %v1780_v33 }
 0xe79   :  { %v824_v24 = vpop.permute.xlu2 %823 }
 0xe7a   :  { %v826_v26 = vmul.f32 %v824_v24, %v816_v25 }
 0xe7c   :  { %828 = vrot.lane.b32.xlu1 %v826_v26, %s1546_s29 }
 0xe81   :  { %v593_v31 = vpop.permute.xlu1 %592 }
 0xe82   :  { %v595_v32 = vmul.f32 %v593_v31, %v588_v30 }
 0xe84   :  { %597 = vrot.lane.b32.xlu0 %v595_v32, %s1546_s29 }
 0xeee   :  { %v829_v34 = vpop.permute.xlu1 %828 }
 0xeef   :  { %v831_v35 = vadd.f32 %v829_v34, %v772_v61 }
 0xef1   :  { %1494 = vtanh.f32 %v831_v35 }
 0xef6   :  { %v598_v36 = vpop.permute.xlu0 %597 }
 0xef7   :  { %v1495_v37 = vpop.eup %1494  ;;  %v600_v38 = vadd.f32 %v598_v36, %v549_v9 }
 0xef8   :  { %835 = vrot.lane.b32.xlu0 %v1495_v37, %s1548_s3 }
 0xef9   :  { %1496 = vtanh.f32 %v600_v38 }
 0xeff   :  { %v1497_v41 = vpop.eup %1496 }
 0xf00   :  { %604 = vrot.lane.b32.xlu2 %v1497_v41, %s1548_s3 }
 0xf5a   :  { %v605_v44 = vpop.permute.xlu2 %604 }
 0xf5b   :  { %v607_v47 = vmul.f32 %v605_v44, %v602_v43 }
 0xf5d   :  { %v1839_v48 = vadd.f32 %v608_v45, %v607_v47 }
 0xf5f   :  { %v618_v50 = vpack.c.bf16 %v1839_v48, %v1839_v48 }
 0xf61   :  { %620 = vrot.lane.b32.xlu1 %v618_v50, %s1548_s3 }
 0xf6a   :  { %v836_v8 = vpop.permute.xlu0 %835 }
 0xf6b   :  { %v838_v53 = vmul.f32 %v836_v8, %v833_v51 }
 0xf6d   :  { %v840_v54 = vadd.f32 %v839_v52, %v838_v53 }
 0xf6f   :  { %v842_v55 = vpack.c.bf16 %v840_v54, %v840_v54 }
 0xf71   :  { %844 = vrot.lane.b32.xlu2 %v842_v55, %s1548_s3 }
 0xfcb   :  { %v845_v59 = vpop.permute.xlu2 %844 }
 0xfd3   :  { %v621_v57 = vpop.permute.xlu1 %620 }
 0xfd4   :  { %1394 = vmatmul.msk.bf16.vlgmr.msra.gmra.mxu2 %vm143_vm7, %v621_v57 }
 0xfd5   :  { %1038 = vmatpush.bf16.msra.mxu2 %v1790_v39 }
 0xfd9   :  { %1039 = vmatpush.bf16.msra.mxu2 %v1796_v40 }
 0xfe4   :  { %1417 = vmatmul.msk.bf16.vlgmr.msrb.gmra.mxu2 %vm143_vm7, %v845_v59 }
 0xfe5   :  { %1221 = vmatpush.bf16.msrb.mxu2 %v1790_v39 }
 0xfe9   :  { %1222 = vmatpush.bf16.msrb.mxu2 %v1796_v40 }
0x1057   :  { %v1851_v60 = vpop.f32.mrf.mxu2 }
0x105f   :  { %v636_v61 = vpop.f32.mrf.mxu2 }
0x1067   :  { %v858_v62 = vpop.f32.mrf.mxu2 }
0x1068   :  { %v882_v63 = vadd.f32 %v858_v62, %v1830_v56  ;;  %v862_v1 = vadd.f32 %v858_v62, %v841_v0 }
0x106a   :  { %884 = vrot.lane.b32.xlu0 %v882_v63, %s1546_s29  ;;  %v1418_v2 = vmul.f32 -1.442695, %v862_v1 }
0x106c   :  { %1498 = vpow2.f32 %v1418_v2 }
0x106f   :  { %v860_v9 = vpop.f32.mrf.mxu2 }
0x1072   :  { %339 = vrot.lane.b32.xlu0 %v1718_v49, %s1548_s3  ;;  %v1499_v3 = vpop.eup %1498 }
0x1073   :  { %v866_v39 = vadd.f32 1.0, %v1499_v3 }
0x1075   :  { %1500 = vrcp.f32 %v866_v39  ;;  %v878_v10 = vand.u32 2147483648, %v866_v39  ;;  %vm872_vm11 = vweird.f32 %v866_v39  ;;  %v876_v11 = vand.u32 2147483647, %v866_v39 }
0x1077   :  { %v879_v15 = vor.u32 1.1754944e-38, %v878_v10  ;;  %vm877_vm13 = vcmp.eq.f32.partialorder %v876_v11, 8.507059e+37 }
0x107b   :  { %v1501_v40 = vpop.eup %1500 }
0x107c   :  { %v868_v4 = vmul.f32 %v1501_v40, %v866_v39  ;;  %vm873_vm10 = vweird.f32 %v1501_v40 }
0x107d   :  { %vm874_vm12 = vmor %vm872_vm11, %vm873_vm10 }
0x107e   :  { %v869_v5 = vsub.f32 1.0, %v868_v4 }
0x1080   :  { %v870_v6 = vmul.f32 %v1501_v40, %v869_v5 }
0x1082   :  { %v871_v7 = vadd.f32 %v1501_v40, %v870_v6 }
0x1084   :  { %v875_v13 = vsel %vm874_vm12, %v1501_v40, %v871_v7 }
0x1085   :  { %v880_v16 = vsel %vm877_vm13, %v879_v15, %v875_v13 }
0x1086   :  { %v894_v42 = vsub.f32 1.0, %v880_v16  ;;  %v900_v28 = vmul.f32 %v880_v16, %v840_v54 }
0x10dc   :  { %v885_v49 = vpop.permute.xlu0 %884 }
0x10dd   :  { %v887_v17 = vmul.f32 %v885_v49, %v880_v16 }
0x10df   :  { %889 = vrot.lane.b32.xlu1 %v887_v17, %s1546_s29 }
0x10e4   :  { %v340_v18 = vpop.permute.xlu0 %339 }
0x10e5   :  { %343 = vst.msk [vmem:[#allocation3 + $0x10] sm:$0xff] %vm143_vm7, %v340_v18 }
0x10e7   :  { %407 = vrot.lane.b32.xlu1 %v1736_v22, %s1548_s3 }
0x10ec   :  { %v686_v24 = vld [vmem:[#allocation3 + $0x10] sm:$0xff] }
0x1151   :  { %v890_v19 = vpop.permute.xlu1 %889 }
0x1152   :  { %v892_v20 = vadd.f32 %v890_v19, %v841_v0 }
0x1154   :  { %1502 = vtanh.f32 %v892_v20 }
0x1159   :  { %v408_v21 = vpop.permute.xlu1 %407 }
0x115a   :  { %v1503_v23 = vpop.eup %1502  ;;  %411 = vst.msk [vmem:[#allocation3 + $0x18] sm:$0xff] %vm143_vm7, %v408_v21 }
0x115b   :  { %896 = vrot.lane.b32.xlu2 %v1503_v23, %s1548_s3 }
0x1161   :  { %v687_v25 = vld [vmem:[#allocation3 + $0x18] sm:$0xff] }
0x1162   :  { %v693_v26 = vpack.c.bf16 %v687_v25, %v686_v24 }
0x1164   :  { %1405 = vmatmul.msk.bf16.gmra.mxu3 %vm143_vm7, %v693_v26 }
0x11b5   :  { %v897_v27 = vpop.permute.xlu2 %896 }
0x11b6   :  { %v899_v29 = vmul.f32 %v897_v27, %v894_v42 }
0x11b8   :  { %v901_v14 = vadd.f32 %v900_v28, %v899_v29 }
0x11ba   :  { %v903_v22 = vpack.c.bf16 %v901_v14, %v901_v14 }
0x11bc   :  { %905 = vrot.lane.b32.xlu2 %v903_v22, %s1548_s3 }
0x11e7   :  { %v742_v30 = vpop.f32.mrf.mxu3 }
0x11e8   :  { %v743_v31 = vadd.f32 %v1820_v46, %v742_v30 }
0x11ea   :  { %759 = vst.msk [vmem:[#allocation2 + $0x10] sm:$0xff] %vm114_vm2, %v743_v31 }
0x11ef   :  { %v744_v32 = vpop.f32.mrf.mxu3 }
0x11f0   :  { %v745_v34 = vadd.f32 %v1820_v46, %v744_v32 }
0x11f1   :  { %v902_v41 = vld [vmem:[#allocation2 + $0x10] sm:$0xff] }
0x11f2   :  { %760 = vst.msk [vmem:[#allocation2 + $0x18] sm:$0xff] %vm114_vm2, %v745_v34 }
0x11f9   :  { %v963_v13 = vld [vmem:[#allocation2 + $0x18] sm:$0xff] }
0x1216   :  { %v906_v35 = vpop.permute.xlu2 %905 }
0x1217   :  { %1419 = vmatmul.msk.bf16.vlgmr.msrb.gmra.mxu0 %vm143_vm7, %v906_v35 }
0x1294   :  { %v919_v36 = vpop.f32.mrf.mxu0 }
0x1295   :  { %v943_v37 = vadd.f32 %v919_v36, %v1830_v56  ;;  %v923_v43 = vadd.f32 %v919_v36, %v902_v41 }
0x1297   :  { %945 = vrot.lane.b32.xlu0 %v943_v37, %s1546_s29  ;;  %v1420_v44 = vmul.f32 -1.442695, %v923_v43 }
0x1299   :  { %1504 = vpow2.f32 %v1420_v44 }
0x129c   :  { %v921_v38 = vpop.f32.mrf.mxu0 }
0x129f   :  { %v1505_v45 = vpop.eup %1504 }
0x12a0   :  { %v927_v47 = vadd.f32 1.0, %v1505_v45 }
0x12a2   :  { %1506 = vrcp.f32 %v927_v47  ;;  %v939_v54 = vand.u32 2147483648, %v927_v47  ;;  %vm933_vm15 = vweird.f32 %v927_v47  ;;  %v937_v55 = vand.u32 2147483647, %v927_v47 }
0x12a4   :  { %v940_v59 = vor.u32 1.1754944e-38, %v939_v54  ;;  %vm938_vm3 = vcmp.eq.f32.partialorder %v937_v55, 8.507059e+37 }
0x12a8   :  { %v1507_v50 = vpop.eup %1506 }
0x12a9   :  { %v929_v51 = vmul.f32 %v1507_v50, %v927_v47  ;;  %vm934_vm14 = vweird.f32 %v1507_v50 }
0x12aa   :  { %vm935_vm0 = vmor %vm933_vm15, %vm934_vm14 }
0x12ab   :  { %v930_v8 = vsub.f32 1.0, %v929_v51 }
0x12ad   :  { %v931_v52 = vmul.f32 %v1507_v50, %v930_v8 }
0x12af   :  { %v932_v53 = vadd.f32 %v1507_v50, %v931_v52 }
0x12b1   :  { %v936_v57 = vsel %vm935_vm0, %v1507_v50, %v932_v53 }
0x12b2   :  { %v941_v62 = vsel %vm938_vm3, %v940_v59, %v936_v57 }
0x12b3   :  { %v955_v2 = vsub.f32 1.0, %v941_v62  ;;  %v961_v39 = vmul.f32 %v941_v62, %v901_v14 }
0x1309   :  { %v946_v61 = vpop.permute.xlu0 %945 }
0x130a   :  { %v948_v63 = vmul.f32 %v946_v61, %v941_v62 }
0x130c   :  { %950 = vrot.lane.b32.xlu1 %v948_v63, %s1546_s29 }
0x137e   :  { %v951_v9 = vpop.permute.xlu1 %950 }
0x137f   :  { %v953_v0 = vadd.f32 %v951_v9, %v902_v41 }
0x1381   :  { %1508 = vtanh.f32 %v953_v0 }
0x1387   :  { %v1509_v1 = vpop.eup %1508 }
0x1388   :  { %957 = vrot.lane.b32.xlu2 %v1509_v1, %s1548_s3 }
0x13e2   :  { %v958_v3 = vpop.permute.xlu2 %957 }
0x13e3   :  { %v960_v40 = vmul.f32 %v958_v3, %v955_v2 }
0x13e5   :  { %v962_v4 = vadd.f32 %v961_v39, %v960_v40 }
0x13e7   :  { %v964_v5 = vpack.c.bf16 %v962_v4, %v962_v4 }
0x13e9   :  { %966 = vrot.lane.b32.xlu0 %v964_v5, %s1548_s3 }
0x145b   :  { %v967_v6 = vpop.permute.xlu0 %966 }
0x145c   :  { %1421 = vmatmul.msk.bf16.vlgmr.msra.gmra.mxu1 %vm143_vm7, %v967_v6 }
0x14d9   :  { %v980_v7 = vpop.f32.mrf.mxu1 }
0x14da   :  { %v1004_v10 = vadd.f32 %v980_v7, %v1830_v56  ;;  %v984_v15 = vadd.f32 %v980_v7, %v963_v13  ;;  %v658_v7 = vadd.f32 %v1851_v60, %v1674_v12 }
0x14dc   :  { %1006 = vrot.lane.b32.xlu1 %v1004_v10, %s1546_s29  ;;  %v1422_v49 = vmul.f32 -1.442695, %v984_v15  ;;  %v617_v15 = vld [vmem:[#allocation2 + $0x38] sm:$0xff] }
0x14de   :  { %1510 = vpow2.f32 %v1422_v49  ;;  %v638_v49 = vadd.f32 %v1851_v60, %v617_v15 }
0x14e1   :  { %v982_v11 = vpop.f32.mrf.mxu1 }
0x14e4   :  { %475 = vrot.lane.b32.xlu1 %v1751_v58, %s1548_s3  ;;  %v1511_v16 = vpop.eup %1510 }
0x14e5   :  { %v988_v17 = vadd.f32 1.0, %v1511_v16  ;;  %v1395_v16 = vmul.f32 -1.442695, %v638_v49 }
0x14e7   :  { %1512 = vrcp.f32 %v988_v17  ;;  %v1000_v24 = vand.u32 2147483648, %v988_v17  ;;  %vm994_vm5 = vweird.f32 %v988_v17  ;;  %v998_v25 = vand.u32 2147483647, %v988_v17 }
0x14e9   :  { %v1001_v42 = vor.u32 1.1754944e-38, %v1000_v24  ;;  %vm999_vm8 = vcmp.eq.f32.partialorder %v998_v25, 8.507059e+37 }
0x14ed   :  { %v1513_v18 = vpop.eup %1512 }
0x14ee   :  { %v990_v19 = vmul.f32 %v1513_v18, %v988_v17  ;;  %vm995_vm4 = vweird.f32 %v1513_v18 }
0x14ef   :  { %vm996_vm6 = vmor %vm994_vm5, %vm995_vm4 }
0x14f0   :  { %v991_v20 = vsub.f32 1.0, %v990_v19 }
0x14f2   :  { %v992_v21 = vmul.f32 %v1513_v18, %v991_v20 }
0x14f4   :  { %v993_v23 = vadd.f32 %v1513_v18, %v992_v21 }
0x14f6   :  { %v997_v26 = vsel %vm996_vm6, %v1513_v18, %v993_v23 }
0x14f7   :  { %v1002_v27 = vsel %vm999_vm8, %v1001_v42, %v997_v26 }
0x14f8   :  { %v1016_v36 = vsub.f32 1.0, %v1002_v27  ;;  %v1022_v38 = vmul.f32 %v1002_v27, %v962_v4 }
0x154e   :  { %v1007_v58 = vpop.permute.xlu1 %1006 }
0x154f   :  { %v1009_v28 = vmul.f32 %v1007_v58, %v1002_v27 }
0x1551   :  { %1011 = vrot.lane.b32.xlu2 %v1009_v28, %s1546_s29 }
0x1556   :  { %v476_v29 = vpop.permute.xlu1 %475 }
0x1557   :  { %479 = vst.msk [vmem:[#allocation3 + $0x20] sm:$0xff] %vm143_vm7, %v476_v29 }
0x1559   :  { %543 = vrot.lane.b32.xlu2 %v1780_v33, %s1548_s3 }
0x155e   :  { %v688_v32 = vld [vmem:[#allocation3 + $0x20] sm:$0xff] }
0x15ab   :  { %v1012_v14 = vpop.permute.xlu2 %1011 }
0x15ac   :  { %v1014_v22 = vadd.f32 %v1012_v14, %v963_v13 }
0x15ae   :  { %1514 = vtanh.f32 %v1014_v22 }
0x15b3   :  { %v544_v30 = vpop.permute.xlu2 %543 }
0x15b4   :  { %v1515_v31 = vpop.eup %1514  ;;  %547 = vst.msk [vmem:[#allocation3 + $0x28] sm:$0xff] %vm143_vm7, %v544_v30 }
0x15b5   :  { %1018 = vrot.lane.b32.xlu0 %v1515_v31, %s1548_s3 }
0x15bb   :  { %v689_v34 = vld [vmem:[#allocation3 + $0x28] sm:$0xff] }
0x15bc   :  { %v694_v35 = vpack.c.bf16 %v689_v34, %v688_v32 }
0x15be   :  { %1406 = vmatmul.msk.bf16.gmra.mxu3 %vm143_vm7, %v694_v35 }
0x1627   :  { %v1019_v37 = vpop.permute.xlu0 %1018 }
0x1628   :  { %v1021_v41 = vmul.f32 %v1019_v37, %v1016_v36 }
0x162a   :  { %v1023_v43 = vadd.f32 %v1022_v38, %v1021_v41 }
0x162c   :  { %v1025_v33 = vpack.c.bf16 %v1023_v43, %v1023_v43 }
0x162e   :  { %1027 = vrot.lane.b32.xlu0 %v1025_v33, %s1548_s3 }
0x1641   :  { %v747_v44 = vpop.f32.mrf.mxu3 }
0x1642   :  { %v748_v45 = vadd.f32 %v1820_v46, %v747_v44 }
0x1644   :  { %761 = vst.msk [vmem:[#allocation2 + $0x20] sm:$0xff] %vm114_vm2, %v748_v45 }
0x1649   :  { %v749_v47 = vpop.f32.mrf.mxu3 }
0x164a   :  { %v750_v50 = vadd.f32 %v1820_v46, %v749_v47 }
0x164b   :  { %v1024_v54 = vld [vmem:[#allocation2 + $0x20] sm:$0xff] }
0x164c   :  { %762 = vst.msk [vmem:[#allocation2 + $0x28] sm:$0xff] %vm114_vm2, %v750_v50 }
0x16a0   :  { %v1028_v51 = vpop.permute.xlu0 %1027 }
0x16a1   :  { %1423 = vmatmul.msk.bf16.vlgmr.msra.gmra.mxu2 %vm143_vm7, %v1028_v51 }
0x1724   :  { %v1041_v8 = vpop.f32.mrf.mxu2 }
0x1725   :  { %v1065_v52 = vadd.f32 %v1041_v8, %v1830_v56  ;;  %v1045_v55 = vadd.f32 %v1041_v8, %v1024_v54 }
0x1727   :  { %1067 = vrot.lane.b32.xlu1 %v1065_v52, %s1546_s29  ;;  %v1424_v57 = vmul.f32 -1.442695, %v1045_v55 }
0x1729   :  { %1516 = vpow2.f32 %v1424_v57 }
0x172c   :  { %v1043_v53 = vpop.f32.mrf.mxu2 }
0x172f   :  { %v1517_v59 = vpop.eup %1516 }
0x1730   :  { %v1049_v61 = vadd.f32 1.0, %v1517_v59 }
0x1732   :  { %1518 = vrcp.f32 %v1049_v61  ;;  %v1061_v2 = vand.u32 2147483648, %v1049_v61  ;;  %vm1055_vm10 = vweird.f32 %v1049_v61  ;;  %v1059_v3 = vand.u32 2147483647, %v1049_v61 }
0x1734   :  { %v1062_v40 = vor.u32 1.1754944e-38, %v1061_v2  ;;  %vm1060_vm12 = vcmp.eq.f32.partialorder %v1059_v3, 8.507059e+37 }
0x1738   :  { %v1519_v62 = vpop.eup %1518 }
0x1739   :  { %v1051_v63 = vmul.f32 %v1519_v62, %v1049_v61  ;;  %vm1056_vm9 = vweird.f32 %v1519_v62 }
0x173a   :  { %vm1057_vm11 = vmor %vm1055_vm10, %vm1056_vm9 }
0x173b   :  { %v1052_v9 = vsub.f32 1.0, %v1051_v63 }
0x173d   :  { %v1053_v0 = vmul.f32 %v1519_v62, %v1052_v9 }
0x173f   :  { %v1054_v1 = vadd.f32 %v1519_v62, %v1053_v0 }
0x1741   :  { %v1058_v39 = vsel %vm1057_vm11, %v1519_v62, %v1054_v1 }
0x1742   :  { %v1063_v5 = vsel %vm1060_vm12, %v1062_v40, %v1058_v39 }
0x1743   :  { %v1077_v12 = vsub.f32 1.0, %v1063_v5  ;;  %v1083_v25 = vmul.f32 %v1063_v5, %v1023_v43  ;;  %v1085_v43 = vld [vmem:[#allocation2 + $0x28] sm:$0xff] }
0x1799   :  { %v1068_v4 = vpop.permute.xlu1 %1067 }
0x179a   :  { %v1070_v6 = vmul.f32 %v1068_v4, %v1063_v5 }
0x179c   :  { %1072 = vrot.lane.b32.xlu2 %v1070_v6, %s1546_s29 }
0x17a4   :  { %660 = vrot.lane.b32.xlu2 %v658_v7, %s1546_s29 }
0x17f6   :  { %v1073_v10 = vpop.permute.xlu2 %1072 }
0x17f7   :  { %v1075_v11 = vadd.f32 %v1073_v10, %v1024_v54 }
0x17f9   :  { %1520 = vtanh.f32 %v1075_v11 }
0x17fa   :  { %1522 = vpow2.f32 %v1395_v16 }
0x17fe   :  { %v661_v22 = vpop.permute.xlu2 %660 }
0x17ff   :  { %v1521_v13 = vpop.eup %1520 }
0x1800   :  { %1079 = vrot.lane.b32.xlu0 %v1521_v13, %s1548_s3  ;;  %v1523_v17 = vpop.eup %1522 }
0x1801   :  { %v642_v18 = vadd.f32 1.0, %v1523_v17 }
0x1803   :  { %1524 = vrcp.f32 %v642_v18  ;;  %v654_v27 = vand.u32 2147483648, %v642_v18  ;;  %vm648_vm14 = vweird.f32 %v642_v18  ;;  %v652_v28 = vand.u32 2147483647, %v642_v18 }
0x1805   :  { %v655_v14 = vor.u32 1.1754944e-38, %v654_v27  ;;  %vm653_vm0 = vcmp.eq.f32.partialorder %v652_v28, 8.507059e+37 }
0x1809   :  { %v1525_v19 = vpop.eup %1524 }
0x180a   :  { %v644_v20 = vmul.f32 %v1525_v19, %v642_v18  ;;  %vm649_vm13 = vweird.f32 %v1525_v19 }
0x180b   :  { %vm650_vm15 = vmor %vm648_vm14, %vm649_vm13 }
0x180c   :  { %v645_v21 = vsub.f32 1.0, %v644_v20 }
0x180e   :  { %v646_v24 = vmul.f32 %v1525_v19, %v645_v21 }
0x1810   :  { %v647_v58 = vadd.f32 %v1525_v19, %v646_v24 }
0x1812   :  { %v651_v29 = vsel %vm650_vm15, %v1525_v19, %v647_v58  ;;  %vm1340_vm15 = vcmask 130048  }
0x1813   :  { %v656_v30 = vsel %vm653_vm0, %v655_v14, %v651_v29 }
0x1814   :  { %v663_v31 = vmul.f32 %v661_v22, %v656_v30  ;;  %v670_v9 = vsub.f32 1.0, %v656_v30  ;;  %v676_v1 = vmul.f32 %v656_v30, %v1839_v48 }
0x1872   :  { %v1080_v23 = vpop.permute.xlu0 %1079 }
0x1873   :  { %v1082_v26 = vmul.f32 %v1080_v23, %v1077_v12 }
0x1875   :  { %v1901_v42 = vadd.f32 %v1083_v25, %v1082_v26 }
0x1877   :  { %v1086_v60 = vpack.c.bf16 %v1901_v42, %v1901_v42 }
0x1879   :  { %1088 = vrot.lane.b32.xlu1 %v1086_v60, %s1548_s3 }
0x1881   :  { %665 = vrot.lane.b32.xlu1 %v663_v31, %s1546_s29 }
0x18eb   :  { %v1089_v32 = vpop.permute.xlu1 %1088 }
0x18ec   :  { %1425 = vmatmul.msk.bf16.vlgmr.msra.gmra.mxu0 %vm143_vm7, %v1089_v32 }
0x18f3   :  { %v666_v34 = vpop.permute.xlu1 %665 }
0x18f4   :  { %v668_v35 = vadd.f32 %v666_v34, %v617_v15 }
0x18f6   :  { %1526 = vtanh.f32 %v668_v35 }
0x18fc   :  { %v1527_v41 = vpop.eup %1526 }
0x1969   :  { %v1102_v36 = vpop.f32.mrf.mxu0 }
0x196a   :  { %v1126_v37 = vadd.f32 %v1102_v36, %v1830_v56  ;;  %v1106_v33 = vadd.f32 %v1102_v36, %v1085_v43 }
0x196c   :  { %1128 = vrot.lane.b32.xlu0 %v1126_v37, %s1546_s29  ;;  %v1426_v44 = vmul.f32 -1.442695, %v1106_v33 }
0x196e   :  { %1528 = vpow2.f32 %v1426_v44 }
0x1971   :  { %v1104_v38 = vpop.f32.mrf.mxu0 }
0x1974   :  { %672 = vrot.lane.b32.xlu0 %v1527_v41, %s1548_s3  ;;  %v1529_v45 = vpop.eup %1528 }
0x1975   :  { %v1110_v47 = vadd.f32 1.0, %v1529_v45 }
0x1977   :  { %1530 = vrcp.f32 %v1110_v47  ;;  %v1122_v54 = vand.u32 2147483648, %v1110_v47  ;;  %vm1116_vm4 = vweird.f32 %v1110_v47  ;;  %v1120_v55 = vand.u32 2147483647, %v1110_v47 }
0x1979   :  { %v1123_v59 = vor.u32 1.1754944e-38, %v1122_v54  ;;  %vm1121_vm6 = vcmp.eq.f32.partialorder %v1120_v55, 8.507059e+37 }
0x197d   :  { %v1531_v50 = vpop.eup %1530 }
0x197e   :  { %v1112_v51 = vmul.f32 %v1531_v50, %v1110_v47  ;;  %vm1117_vm3 = vweird.f32 %v1531_v50 }
0x197f   :  { %vm1118_vm5 = vmor %vm1116_vm4, %vm1117_vm3 }
0x1980   :  { %v1113_v8 = vsub.f32 1.0, %v1112_v51 }
0x1982   :  { %v1114_v52 = vmul.f32 %v1531_v50, %v1113_v8 }
0x1984   :  { %v1115_v53 = vadd.f32 %v1531_v50, %v1114_v52 }
0x1986   :  { %v1119_v57 = vsel %vm1118_vm5, %v1531_v50, %v1115_v53 }
0x1987   :  { %v1124_v62 = vsel %vm1121_vm6, %v1123_v59, %v1119_v57 }
0x1988   :  { %v1144_v15 = vmul.f32 %v1124_v62, %v1901_v42 }
0x19de   :  { %v1129_v61 = vpop.permute.xlu0 %1128 }
0x19df   :  { %v1131_v63 = vmul.f32 %v1129_v61, %v1124_v62 }
0x19e1   :  { %1133 = vrot.lane.b32.xlu2 %v1131_v63, %s1546_s29 }
0x19e6   :  { %v673_v0 = vpop.permute.xlu0 %672 }
0x19e7   :  { %v675_v2 = vmul.f32 %v673_v0, %v670_v9 }
0x19e9   :  { %v677_v3 = vadd.f32 %v676_v1, %v675_v2  ;;  %611 = vrot.lane.b32.xlu2 %v1839_v48, %s1548_s3  ;;  %v1138_v48 = vsub.f32 1.0, %v1124_v62 }
0x19eb   :  { %679 = vrot.lane.b32.xlu0 %v677_v3, %s1548_s3 }
0x1a3b   :  { %v1134_v39 = vpop.permute.xlu2 %1133 }
0x1a3c   :  { %v1136_v40 = vadd.f32 %v1134_v39, %v1085_v43 }
0x1a3e   :  { %1532 = vtanh.f32 %v1136_v40 }
0x1a43   :  { %v612_v4 = vpop.permute.xlu2 %611 }
0x1a44   :  { %v1533_v5 = vpop.eup %1532  ;;  %615 = vst.msk [vmem:[#allocation3 + $0x30] sm:$0xff] %vm143_vm7, %v612_v4 }
0x1a45   :  { %1140 = vrot.lane.b32.xlu1 %v1533_v5, %s1548_s3 }
0x1a4b   :  { %v690_v7 = vld [vmem:[#allocation3 + $0x30] sm:$0xff] }
0x1a5d   :  { %v680_v6 = vpop.permute.xlu0 %679 }
0x1a5e   :  { %683 = vst.msk [vmem:[#allocation3 + $0x38] sm:$0xff] %vm143_vm7, %v680_v6 }
0x1a65   :  { %v691_v10 = vld [vmem:[#allocation3 + $0x38] sm:$0xff] }
0x1a66   :  { %v695_v11 = vpack.c.bf16 %v691_v10, %v690_v7 }
0x1a68   :  { %1407 = vmatmul.msk.bf16.gmra.mxu3 %vm143_vm7, %v695_v11 }
0x1ab7   :  { %v1141_v13 = vpop.permute.xlu1 %1140 }
0x1ab8   :  { %v1143_v49 = vmul.f32 %v1141_v13, %v1138_v48  ;;  %v1271_v48 = vld [vmem:[%s1988_s9 + $0x18] sm:$0xff]  ;;  %v1270_v13 = vld [vmem:[%s1988_s9 + $0x10] sm:$0xff] }
0x1ab9   :  { %1293 = vmatpush.msrb.mxu0 %v1271_v48 }
0x1aba   :  { %v1145_v16 = vadd.f32 %v1144_v15, %v1143_v49  ;;  %v1269_v15 = vld [vmem:[%s1988_s9 + $0x8] sm:$0xff]  ;;  %v1268_v49 = vld [vmem:[%s1988_s9] sm:$0xff] }
0x1abb   :  { %1294 = vmatpush.msrb.mxu0 %v1270_v13 }
0x1abc   :  { %v1147_v17 = vpack.c.bf16 %v1145_v16, %v1145_v16 }
0x1abd   :  { %1295 = vmatpush.msrb.mxu0 %v1269_v15 }
0x1abe   :  { %1149 = vrot.lane.b32.xlu1 %v1147_v17, %s1548_s3 }
0x1abf   :  { %1296 = vmatpush.msrb.mxu0 %v1268_v49 }
0x1aeb   :  { %v752_v18 = vpop.f32.mrf.mxu3 }
0x1aec   :  { %v753_v19 = vadd.f32 %v1820_v46, %v752_v18 }
0x1aee   :  { %763 = vst.msk [vmem:[#allocation2 + $0x30] sm:$0xff] %vm114_vm2, %v753_v19 }
0x1af3   :  { %v754_v20 = vpop.f32.mrf.mxu3 }
0x1af4   :  { %v755_v21 = vadd.f32 %v1820_v46, %v754_v20 }
0x1af5   :  { %v1146_v26 = vld [vmem:[#allocation2 + $0x30] sm:$0xff] }
0x1af6   :  { %764 = vst.msk [vmem:[#allocation2 + $0x38] sm:$0xff] %vm114_vm2, %v755_v21  ;;  %v1304_v21 = vld [vmem:[%s1990_s11 + $0x10] sm:$0xff] }
0x1af7   :  { %1326 = vmatpush.msra.mxu1 %v1304_v21 }
0x1afd   :  { %v1207_v55 = vld [vmem:[#allocation2 + $0x38] sm:$0xff] }
0x1b30   :  { %v1150_v12 = vpop.permute.xlu1 %1149 }
0x1b31   :  { %1427 = vmatmul.msk.bf16.vlgmr.msrb.gmra.mxu1 %vm143_vm7, %v1150_v12  ;;  %v1303_v12 = vld [vmem:[%s1990_s11 + $0x8] sm:$0xff] }
0x1b32   :  { %1327 = vmatpush.msra.mxu1 %v1303_v12 }
0x1bae   :  { %v1163_v23 = vpop.f32.mrf.mxu1 }
0x1baf   :  { %v1187_v24 = vadd.f32 %v1163_v23, %v1830_v56  ;;  %v1167_v42 = vadd.f32 %v1163_v23, %v1146_v26 }
0x1bb1   :  { %1189 = vrot.lane.b32.xlu2 %v1187_v24, %s1546_s29  ;;  %v1428_v58 = vmul.f32 -1.442695, %v1167_v42  ;;  %v1302_v24 = vld [vmem:[%s1990_s11] sm:$0xff] }
0x1bb2   :  { %1328 = vmatpush.msra.mxu1 %v1302_v24  ;;  %v1447_v42 = vld [vmem:[%s1989_s10] ss:$0 sm:$0xff] }
0x1bb3   :  { %1534 = vpow2.f32 %v1428_v58 }
0x1bb6   :  { %v1165_v25 = vpop.f32.mrf.mxu1 }
0x1bb7   :  { %v1335_v25 = vld [vmem:[%s1992_s13 + $0x8] sm:$0xff] }
0x1bb8   :  { %1358 = vmatpush.msra.mxu2 %v1335_v25 }
0x1bb9   :  { %v1535_v60 = vpop.eup %1534 }
0x1bba   :  { %v1171_v27 = vadd.f32 1.0, %v1535_v60 }
0x1bbc   :  { %1536 = vrcp.f32 %v1171_v27  ;;  %v1183_v30 = vand.u32 2147483648, %v1171_v27  ;;  %vm1177_vm8 = vweird.f32 %v1171_v27  ;;  %v1181_v31 = vand.u32 2147483647, %v1171_v27 }
0x1bbe   :  { %v1184_v34 = vor.u32 1.1754944e-38, %v1183_v30  ;;  %vm1182_vm10 = vcmp.eq.f32.partialorder %v1181_v31, 8.507059e+37 }
0x1bc2   :  { %v1537_v28 = vpop.eup %1536 }
0x1bc3   :  { %v1173_v46 = vmul.f32 %v1537_v28, %v1171_v27  ;;  %vm1178_vm2 = vweird.f32 %v1537_v28 }
0x1bc4   :  { %vm1179_vm9 = vmor %vm1177_vm8, %vm1178_vm2 }
0x1bc5   :  { %v1174_v29 = vsub.f32 1.0, %v1173_v46 }
0x1bc7   :  { %v1175_v14 = vmul.f32 %v1537_v28, %v1174_v29 }
0x1bc9   :  { %v1176_v22 = vadd.f32 %v1537_v28, %v1175_v14 }
0x1bcb   :  { %v1180_v32 = vsel %vm1179_vm9, %v1537_v28, %v1176_v22  ;;  %v1448_v28 = vld [vmem:[%s1991_s12] ss:$0 sm:$0xff] }
0x1bcc   :  { %v1185_v35 = vsel %vm1182_vm10, %v1184_v34, %v1180_v32  ;;  %v1449_v22 = vld [vmem:[%s1993_s14] ss:$0 sm:$0xff] }
0x1bcd   :  { %v1199_v33 = vsub.f32 1.0, %v1185_v35  ;;  %v1205_v45 = vmul.f32 %v1185_v35, %v1145_v16 }
0x1c0b   :  { %v1190_v36 = vpop.permute.xlu2 %1189 }
0x1c0c   :  { %v1192_v37 = vmul.f32 %v1190_v36, %v1185_v35 }
0x1c0e   :  { %1194 = vrot.lane.b32.xlu0 %v1192_v37, %s1546_s29 }
0x1c80   :  { %v1195_v38 = vpop.permute.xlu0 %1194 }
0x1c81   :  { %v1197_v41 = vadd.f32 %v1195_v38, %v1146_v26  ;;  %v1334_v26 = vld [vmem:[%s1992_s13] sm:$0xff] }
0x1c82   :  { %1359 = vmatpush.msra.mxu2 %v1334_v26 }
0x1c83   :  { %1538 = vtanh.f32 %v1197_v41 }
0x1c89   :  { %v1539_v43 = vpop.eup %1538 }
0x1c8a   :  { %1201 = vrot.lane.b32.xlu1 %v1539_v43, %s1548_s3 }
0x1cfc   :  { %v1202_v44 = vpop.permute.xlu1 %1201 }
0x1cfd   :  { %v1204_v47 = vmul.f32 %v1202_v44, %v1199_v33 }
0x1cff   :  { %v1206_v50 = vadd.f32 %v1205_v45, %v1204_v47 }
0x1d01   :  { %v1208_v51 = vpack.c.bf16 %v1206_v50, %v1206_v50 }
0x1d03   :  { %1210 = vrot.lane.b32.xlu2 %v1208_v51, %s1548_s3 }
0x1d5d   :  { %v1211_v8 = vpop.permute.xlu2 %1210 }
0x1d5e   :  { %1429 = vmatmul.msk.bf16.vlgmr.msrb.gmra.mxu2 %vm143_vm7, %v1211_v8 }
0x1de1   :  { %v1224_v52 = vpop.f32.mrf.mxu2 }
0x1de2   :  { %v1248_v53 = vadd.f32 %v1224_v52, %v1830_v56  ;;  %v1228_v57 = vadd.f32 %v1224_v52, %v1207_v55 }
0x1de4   :  { %1250 = vrot.lane.b32.xlu0 %v1248_v53, %s1546_s29  ;;  %v1430_v59 = vmul.f32 -1.442695, %v1228_v57 }
0x1de6   :  { %1540 = vpow2.f32 %v1430_v59 }
0x1de9   :  { %v1226_v54 = vpop.f32.mrf.mxu2 }
0x1dec   :  { %v1541_v61 = vpop.eup %1540 }
0x1ded   :  { %v1232_v62 = vadd.f32 1.0, %v1541_v61 }
0x1def   :  { %1542 = vrcp.f32 %v1232_v62  ;;  %v1244_v3 = vand.u32 2147483648, %v1232_v62  ;;  %vm1238_vm12 = vweird.f32 %v1232_v62  ;;  %v1242_v39 = vand.u32 2147483647, %v1232_v62 }
0x1df1   :  { %v1245_v40 = vor.u32 1.1754944e-38, %v1244_v3  ;;  %vm1243_vm14 = vcmp.eq.f32.partialorder %v1242_v39, 8.507059e+37 }
0x1df5   :  { %v1543_v63 = vpop.eup %1542 }
0x1df6   :  { %v1234_v9 = vmul.f32 %v1543_v63, %v1232_v62  ;;  %vm1239_vm11 = vweird.f32 %v1543_v63 }
0x1df7   :  { %vm1240_vm13 = vmor %vm1238_vm12, %vm1239_vm11 }
0x1df8   :  { %v1235_v0 = vsub.f32 1.0, %v1234_v9 }
0x1dfa   :  { %v1236_v1 = vmul.f32 %v1543_v63, %v1235_v0 }
0x1dfc   :  { %v1237_v2 = vadd.f32 %v1543_v63, %v1236_v1 }
0x1dfe   :  { %v1241_v56 = vsel %vm1240_vm13, %v1543_v63, %v1237_v2 }
0x1dff   :  { %v1246_v5 = vsel %vm1243_vm14, %v1245_v40, %v1241_v56 }
0x1e00   :  { %v1260_v16 = vsub.f32 1.0, %v1246_v5  ;;  %v1266_v18 = vmul.f32 %v1246_v5, %v1206_v50 }
0x1e56   :  { %v1251_v4 = vpop.permute.xlu0 %1250 }
0x1e57   :  { %v1253_v6 = vmul.f32 %v1251_v4, %v1246_v5 }
0x1e59   :  { %1255 = vrot.lane.b32.xlu1 %v1253_v6, %s1546_s29 }
0x1ecb   :  { %v1256_v7 = vpop.permute.xlu1 %1255 }
0x1ecc   :  { %v1258_v10 = vadd.f32 %v1256_v7, %v1207_v55 }
0x1ece   :  { %1544 = vtanh.f32 %v1258_v10 }
0x1ed4   :  { %v1545_v11 = vpop.eup %1544 }
0x1ed5   :  { %1262 = vrot.lane.b32.xlu2 %v1545_v11, %s1548_s3 }
0x1f2f   :  { %v1263_v17 = vpop.permute.xlu2 %1262 }
0x1f30   :  { %v1265_v19 = vmul.f32 %v1263_v17, %v1260_v16 }
0x1f32   :  { %v1267_v20 = vadd.f32 %v1266_v18, %v1265_v19 }
0x1f34   :  { %1277 = vrot.lane.b32.xlu0 %v1267_v20, %s1548_s3 }
0x1fa6   :  { %v1278_v23 = vpop.permute.xlu0 %1277 }
0x1fa7   :  { %1431 = vmatmul.msk.f32.vlgmr.msrb.gmra.mxu0 %vm143_vm7, %v1278_v23  ;;  %vm1309_vm7 = vcmask 195584  }
0x2024   :  { %v1298_v58 = vpop.f32.mrf.mxu0 }
0x2025   :  { %v1299_v60 = vadd.f32 %v1447_v42, %v1298_v58 }
0x2027   :  { %v1301_v27 = vmax.f32 %v1299_v60, 0.0 }
0x2029   :  { %1432 = vmatmul.msk.f32.vlgmr.msra.gmra.mxu1 %vm1309_vm7, %v1301_v27 }
0x20a6   :  { %v1330_v46 = vpop.f32.mrf.mxu1 }
0x20a7   :  { %v1331_v29 = vadd.f32 %v1448_v28, %v1330_v46 }
0x20a9   :  { %v1333_v14 = vmax.f32 %v1331_v29, 0.0 }
0x20ab   :  { %1433 = vmatmul.msk.f32.vlgmr.msra.gmra.mxu2 %vm1340_vm15, %v1333_v14 }
0x212e   :  { %v1361_v30 = vpop.f32.mrf.mxu2 }
0x212f   :  { %v1362_v31 = vadd.f32 %v1449_v22, %v1361_v30 }
0x2131   :  { %1364 = vst.msk [vmem:[%s1994_s15] sm:$0xff] %vm68_vm1, %v1362_v31 }

</bundles_post_ra>
